<compile_context>
chip_gen: v7x
topology: tpu7x:2x2x1
jax: 0.10.0
libtpu: 0.0.40
codegen_flags: <defaults>
</compile_context>

<pallas_src>
import functools
import math

import jax
import jax.numpy as jnp
import numpy as np
from jax.experimental import pallas as pl
from jax.experimental.pallas import tpu as pltpu  # noqa: F401  (TPU backend)

# ----------------------------- model config (small, synthetic) ----------------
VOCAB = 64
TYPE_VOCAB = 2
MAX_POS = 16
HIDDEN = 32
NUM_HEADS = 4
HEAD_DIM = HIDDEN // NUM_HEADS
INTERMEDIATE = 64
NUM_LAYERS = 2
LN_EPS = 1e-12          # matches HF BERT config
POOLER_TYPE = "avg"     # Pooler('avg'): masked mean of last hidden states


# ----------------------------- math helpers (usable inside the kernel) --------
def _erf(x):
    # Abramowitz & Stegun 7.1.26 rational approximation (max abs err ~1.5e-7).
    # exp/abs/select only, lowers cleanly in Mosaic.
    a1, a2, a3, a4, a5 = 0.254829592, -0.284496736, 1.421413741, -1.453152027, 1.061405429
    p = 0.3275911
    sgn = jnp.where(x >= 0.0, 1.0, -1.0)
    ax = jnp.abs(x)
    t = 1.0 / (1.0 + p * ax)
    poly = ((((a5 * t + a4) * t + a3) * t + a2) * t + a1) * t
    return sgn * (1.0 - poly * jnp.exp(-ax * ax))


def _gelu_exact(x):
    return 0.5 * x * (1.0 + _erf(x * (1.0 / math.sqrt(2.0))))


def _layernorm(x, g, b, eps=LN_EPS):
    mu = jnp.mean(x, axis=-1, keepdims=True)
    var = jnp.mean(jnp.square(x - mu), axis=-1, keepdims=True)
    return (x - mu) * jax.lax.rsqrt(var + eps) * g + b


# ----------------------------- fused encoder kernel ----------------------------
def encoder_kernel(
    emb_ref,        # (B*S, H)   embedding sum (pre-LayerNorm)
    mask_ref,       # (B, S)     attention mask (float)
    eg_ref, eb_ref,                 # (1, H)      embedding LN gamma/beta
    wqkv_ref, bqkv_ref,             # (L, H, 3H), (L, 1, 3H)
    wo_ref, bo_ref,                 # (L, H, H),  (L, 1, H)
    g1_ref, b1g_ref,                # (L, 1, H)   attn-output LN
    w1_ref, b1_ref,                 # (L, H, I),  (L, 1, I)
    w2_ref, b2_ref,                 # (L, I, H),  (L, 1, H)
    g2_ref, b2g_ref,                # (L, 1, H)   FFN-output LN
    last_ref,       # out (B, S, H)
    pool_ref,       # out (B, H)
    *, num_layers, num_heads, head_dim, batch, seq,
):
    h_dim = num_heads * head_dim
    m_rows = batch * seq
    scale = 1.0 / math.sqrt(head_dim)

    # Embedding LayerNorm.
    x = _layernorm(emb_ref[...], eg_ref[...], eb_ref[...])          # (M, H)

    mask = mask_ref[...]                                            # (B, S)
    # HF-style additive key bias, broadcast once (hoisted out of all loops).
    key_bias3 = ((1.0 - mask) * -10000.0)[:, None, :]               # (B, 1, S)

    for l in range(num_layers):                                     # static unroll (L=2)
        # --- self-attention: fused QKV projection -------------------------------
        qkv = (jnp.dot(x, wqkv_ref[l], preferred_element_type=jnp.float32)
               + bqkv_ref[l])                                       # (M, 3H)
        wo = wo_ref[l]                                              # (H, H)

        acc = jnp.zeros((m_rows, h_dim), jnp.float32)
        for h in range(num_heads):                                  # static unroll (4 heads)
            lo = h * head_dim
            q = qkv[:, lo:lo + head_dim].reshape(batch, seq, head_dim)
            k = qkv[:, h_dim + lo:h_dim + lo + head_dim].reshape(batch, seq, head_dim)
            v = qkv[:, 2 * h_dim + lo:2 * h_dim + lo + head_dim].reshape(batch, seq, head_dim)

            # scores: batched over B, contract head_dim (no explicit k.T).
            s = jax.lax.dot_general(
                q, k, (((2,), (2,)), ((0,), (0,))),
                preferred_element_type=jnp.float32) * scale         # (B, S, S)
            s = s + key_bias3
            s = s - jnp.max(s, axis=-1, keepdims=True)
            p = jnp.exp(s)
            p = p / jnp.sum(p, axis=-1, keepdims=True)

            ctx = jax.lax.dot_general(
                p, v, (((2,), (1,)), ((0,), (0,))),
                preferred_element_type=jnp.float32)                 # (B, S, dH)

            # Output projection accumulated per head against the matching
            # row-block of W_o (== concat(ctx_heads) @ W_o, no concat needed).
            acc = acc + jnp.dot(ctx.reshape(m_rows, head_dim),
                                wo[lo:lo + head_dim, :],
                                preferred_element_type=jnp.float32)

        attn_out = acc + bo_ref[l]
        x = _layernorm(x + attn_out, g1_ref[l], b1g_ref[l])         # fused residual + LN

        # --- feed-forward --------------------------------------------------------
        ff = jnp.dot(x, w1_ref[l], preferred_element_type=jnp.float32) + b1_ref[l]
        ff = _gelu_exact(ff)
        ff = jnp.dot(ff, w2_ref[l], preferred_element_type=jnp.float32) + b2_ref[l]
        x = _layernorm(x + ff, g2_ref[l], b2g_ref[l])               # fused residual + LN

    # --- outputs: last hidden state + masked-average pooler ----------------------
    last = x.reshape(batch, seq, h_dim)
    last_ref[...] = last.astype(last_ref.dtype)

    num = jnp.sum(last * mask[:, :, None], axis=1)                  # (B, H)
    den = jnp.maximum(jnp.sum(mask, axis=1, keepdims=True), 1e-9)   # clamp (all-pad rows)
    pool_ref[...] = (num / den).astype(pool_ref.dtype)


# ----------------------------- parameter init ----------------------------------
def init_params(key):
    def normal(k, shape):
        return 0.02 * jax.random.normal(k, shape, dtype=jnp.float32)

    keys = jax.random.split(key, 4)
    lkeys = jax.random.split(keys[3], NUM_LAYERS * 4)

    params = {
        "word_emb": normal(keys[0], (VOCAB, HIDDEN)),
        "pos_emb": normal(keys[1], (MAX_POS, HIDDEN)),
        "type_emb": normal(keys[2], (TYPE_VOCAB, HIDDEN)),
        "emb_ln_g": jnp.ones((1, HIDDEN), jnp.float32),
        "emb_ln_b": jnp.zeros((1, HIDDEN), jnp.float32),
        # per-layer weights stacked on a leading layer axis (kept VMEM-resident)
        "wqkv": jnp.stack([normal(lkeys[4 * l + 0], (HIDDEN, 3 * HIDDEN))
                           for l in range(NUM_LAYERS)]),
        "bqkv": jnp.zeros((NUM_LAYERS, 1, 3 * HIDDEN), jnp.float32),
        "wo": jnp.stack([normal(lkeys[4 * l + 1], (HIDDEN, HIDDEN))
                         for l in range(NUM_LAYERS)]),
        "bo": jnp.zeros((NUM_LAYERS, 1, HIDDEN), jnp.float32),
        "ln1_g": jnp.ones((NUM_LAYERS, 1, HIDDEN), jnp.float32),
        "ln1_b": jnp.zeros((NUM_LAYERS, 1, HIDDEN), jnp.float32),
        "w1": jnp.stack([normal(lkeys[4 * l + 2], (HIDDEN, INTERMEDIATE))
                         for l in range(NUM_LAYERS)]),
        "b1": jnp.zeros((NUM_LAYERS, 1, INTERMEDIATE), jnp.float32),
        "w2": jnp.stack([normal(lkeys[4 * l + 3], (INTERMEDIATE, HIDDEN))
                         for l in range(NUM_LAYERS)]),
        "b2": jnp.zeros((NUM_LAYERS, 1, HIDDEN), jnp.float32),
        "ln2_g": jnp.ones((NUM_LAYERS, 1, HIDDEN), jnp.float32),
        "ln2_b": jnp.zeros((NUM_LAYERS, 1, HIDDEN), jnp.float32),
    }
    return params


# ----------------------------- forward pass -------------------------------------
def model_for_se_forward(params, input_ids, attention_mask, token_type_ids=None):
    B, S = input_ids.shape
    if token_type_ids is None:
        token_type_ids = jnp.zeros_like(input_ids)

    # Embedding gathers (plain-XLA glue; the rest of the forward is one kernel).
    positions = jnp.arange(S)
    emb = (jnp.take(params["word_emb"], input_ids, axis=0)
           + jnp.take(params["pos_emb"], positions, axis=0)[None, :, :]
           + jnp.take(params["type_emb"], token_type_ids, axis=0))          # (B, S, H)
    mask_f = attention_mask.astype(jnp.float32)                             # (B, S)

    kernel = functools.partial(
        encoder_kernel,
        num_layers=NUM_LAYERS, num_heads=NUM_HEADS, head_dim=HEAD_DIM,
        batch=B, seq=S)

    # Single gridless pallas_call: every operand is loaded whole into VMEM
    # (~70 KB of weights + a 2 KB activation slab) and stays resident.
    last_hidden, pooled = pl.pallas_call(
        kernel,
        out_shape=(jax.ShapeDtypeStruct((B, S, HIDDEN), jnp.float32),
                   jax.ShapeDtypeStruct((B, HIDDEN), jnp.float32)),
    )(emb.reshape(B * S, HIDDEN), mask_f,
      params["emb_ln_g"], params["emb_ln_b"],
      params["wqkv"], params["bqkv"], params["wo"], params["bo"],
      params["ln1_g"], params["ln1_b"],
      params["w1"], params["b1"], params["w2"], params["b2"],
      params["ln2_g"], params["ln2_b"])

    if POOLER_TYPE in ("cls", "cls_before_pooler"):
        pooler_output = last_hidden[:, 0]
    elif POOLER_TYPE == "avg":
        pooler_output = pooled
    else:
        raise NotImplementedError(POOLER_TYPE)
    # TODO(synk): 'avg_top2' / 'avg_first_last' poolers need hidden_states from
    # every layer; not emitted by this fused kernel.

    return {"pooler_output": pooler_output, "last_hidden_state": last_hidden}


# ----------------------------- pure-JAX reference (correctness check) ------------
def reference_forward(params, input_ids, attention_mask, token_type_ids):
    B, S = input_ids.shape
    H, nH, dH = HIDDEN, NUM_HEADS, HEAD_DIM
    positions = jnp.arange(S)
    emb = (jnp.take(params["word_emb"], input_ids, axis=0)
           + jnp.take(params["pos_emb"], positions, axis=0)[None, :, :]
           + jnp.take(params["type_emb"], token_type_ids, axis=0))
    x = _layernorm(emb.reshape(B * S, H), params["emb_ln_g"], params["emb_ln_b"])
    mask = attention_mask.astype(jnp.float32)
    bias4 = (1.0 - mask)[:, None, None, :] * -10000.0
    scale = 1.0 / math.sqrt(dH)

    for l in range(NUM_LAYERS):
        qkv = x @ params["wqkv"][l] + params["bqkv"][l]
        q, k, v = jnp.split(qkv, 3, axis=-1)
        def heads(t):
            return t.reshape(B, S, nH, dH).transpose(0, 2, 1, 3)
        q, k, v = heads(q), heads(k), heads(v)
        s = jnp.einsum("bhqd,bhkd->bhqk", q, k) * scale + bias4
        p = jax.nn.softmax(s, axis=-1)
        ctx = jnp.einsum("bhqk,bhkd->bhqd", p, v).transpose(0, 2, 1, 3).reshape(B * S, H)
        attn = ctx @ params["wo"][l] + params["bo"][l]
        x = _layernorm(x + attn, params["ln1_g"][l], params["ln1_b"][l])
        ff = _gelu_exact(x @ params["w1"][l] + params["b1"][l])
        ff = ff @ params["w2"][l] + params["b2"][l]
        x = _layernorm(x + ff, params["ln2_g"][l], params["ln2_b"][l])

    last = x.reshape(B, S, H)
    den = jnp.maximum(mask.sum(-1, keepdims=True), 1e-9)
    pool = (last * mask[..., None]).sum(1) / den
    return {"pooler_output": pool, "last_hidden_state": last}


# ----------------------------- main ---------------------------------------------
if __name__ == "__main__":
    key = jax.random.PRNGKey(0)
    pkey, ikey = jax.random.split(key)
    params = init_params(pkey)

    B, S = 2, 8
    input_ids = jax.random.randint(ikey, (B, S), 0, VOCAB, dtype=jnp.int32)
    # Second sequence has padding on the last 3 tokens.
    attention_mask = jnp.array(
        [[1, 1, 1, 1, 1, 1, 1, 1],
         [1, 1, 1, 1, 1, 0, 0, 0]], dtype=jnp.int32)
    token_type_ids = jnp.zeros((B, S), dtype=jnp.int32)

    fwd = jax.jit(model_for_se_forward)
    out = fwd(params, input_ids, attention_mask, token_type_ids)
    jax.block_until_ready(out)

    assert out["pooler_output"].shape == (B, HIDDEN)
    assert out["last_hidden_state"].shape == (B, S, HIDDEN)

    ref = reference_forward(params, input_ids, attention_mask, token_type_ids)
    np.testing.assert_allclose(np.asarray(out["last_hidden_state"]),
                               np.asarray(ref["last_hidden_state"]),
                               rtol=1e-3, atol=1e-3)
    np.testing.assert_allclose(np.asarray(out["pooler_output"]),
                               np.asarray(ref["pooler_output"]),
                               rtol=1e-3, atol=1e-3)
    print("KERNEL_OK")
</pallas_src>

<mosaic_0001>
module attributes {stable_mosaic.version = 11 : i64} {
  func.func @encoder_kernel(%arg0: memref<16x32xf32, #tpu.memory_space<vmem>>, %arg1: memref<2x8xf32, #tpu.memory_space<vmem>>, %arg2: memref<1x32xf32, #tpu.memory_space<vmem>>, %arg3: memref<1x32xf32, #tpu.memory_space<vmem>>, %arg4: memref<2x32x96xf32, #tpu.memory_space<vmem>>, %arg5: memref<2x1x96xf32, #tpu.memory_space<vmem>>, %arg6: memref<2x32x32xf32, #tpu.memory_space<vmem>>, %arg7: memref<2x1x32xf32, #tpu.memory_space<vmem>>, %arg8: memref<2x1x32xf32, #tpu.memory_space<vmem>>, %arg9: memref<2x1x32xf32, #tpu.memory_space<vmem>>, %arg10: memref<2x32x64xf32, #tpu.memory_space<vmem>>, %arg11: memref<2x1x64xf32, #tpu.memory_space<vmem>>, %arg12: memref<2x64x32xf32, #tpu.memory_space<vmem>>, %arg13: memref<2x1x32xf32, #tpu.memory_space<vmem>>, %arg14: memref<2x1x32xf32, #tpu.memory_space<vmem>>, %arg15: memref<2x1x32xf32, #tpu.memory_space<vmem>>, %arg16: memref<2x8x32xf32, #tpu.memory_space<vmem>>, %arg17: memref<2x32xf32, #tpu.memory_space<vmem>>) attributes {dimension_semantics = [], scalar_prefetch = 0 : i64, scratch_operands = 0 : i64, tpu.core_type = #tpu.core_type<tc>} {
    %c0 = arith.constant 0 : index
    %c0_0 = arith.constant 0 : index
    %0 = vector.load %arg0[%c0, %c0_0] : memref<16x32xf32, #tpu.memory_space<vmem>>, vector<16x32xf32>
    %c0_1 = arith.constant 0 : index
    %c0_2 = arith.constant 0 : index
    %1 = vector.load %arg2[%c0_1, %c0_2] : memref<1x32xf32, #tpu.memory_space<vmem>>, vector<1x32xf32>
    %c0_3 = arith.constant 0 : index
    %c0_4 = arith.constant 0 : index
    %2 = vector.load %arg3[%c0_3, %c0_4] : memref<1x32xf32, #tpu.memory_space<vmem>>, vector<1x32xf32>
    %cst = arith.constant dense<0.000000e+00> : vector<16xf32>
    %3 = vector.multi_reduction <add>, %0, %cst [1] : vector<16x32xf32> to vector<16xf32>
    %4 = vector.shape_cast %3 : vector<16xf32> to vector<16x1xf32>
    %cst_5 = arith.constant 3.200000e+01 : f32
    %5 = vector.broadcast %cst_5 : f32 to vector<16x1xf32>
    %6 = arith.divf %4, %5 : vector<16x1xf32>
    %7 = vector.broadcast %6 : vector<16x1xf32> to vector<16x32xf32>
    %8 = arith.subf %0, %7 : vector<16x32xf32>
    %9 = arith.mulf %8, %8 : vector<16x32xf32>
    %cst_6 = arith.constant dense<0.000000e+00> : vector<16xf32>
    %10 = vector.multi_reduction <add>, %9, %cst_6 [1] : vector<16x32xf32> to vector<16xf32>
    %11 = vector.shape_cast %10 : vector<16xf32> to vector<16x1xf32>
    %cst_7 = arith.constant 3.200000e+01 : f32
    %12 = vector.broadcast %cst_7 : f32 to vector<16x1xf32>
    %13 = arith.divf %11, %12 : vector<16x1xf32>
    %14 = vector.broadcast %6 : vector<16x1xf32> to vector<16x32xf32>
    %15 = arith.subf %0, %14 : vector<16x32xf32>
    %cst_8 = arith.constant 9.99999996E-13 : f32
    %16 = vector.broadcast %cst_8 : f32 to vector<16x1xf32>
    %17 = arith.addf %13, %16 : vector<16x1xf32>
    %18 = math.rsqrt %17 : vector<16x1xf32>
    %19 = vector.broadcast %18 : vector<16x1xf32> to vector<16x32xf32>
    %20 = arith.mulf %15, %19 : vector<16x32xf32>
    %21 = vector.broadcast %1 : vector<1x32xf32> to vector<16x32xf32>
    %22 = arith.mulf %20, %21 : vector<16x32xf32>
    %23 = vector.broadcast %2 : vector<1x32xf32> to vector<16x32xf32>
    %24 = arith.addf %22, %23 : vector<16x32xf32>
    %c0_9 = arith.constant 0 : index
    %c0_10 = arith.constant 0 : index
    %25 = vector.load %arg1[%c0_9, %c0_10] : memref<2x8xf32, #tpu.memory_space<vmem>>, vector<2x8xf32>
    %cst_11 = arith.constant 1.000000e+00 : f32
    %26 = vector.broadcast %cst_11 : f32 to vector<2x8xf32>
    %27 = arith.subf %26, %25 : vector<2x8xf32>
    %cst_12 = arith.constant -1.000000e+04 : f32
    %28 = vector.broadcast %cst_12 : f32 to vector<2x8xf32>
    %29 = arith.mulf %27, %28 : vector<2x8xf32>
    %30 = vector.shape_cast %29 : vector<2x8xf32> to vector<2x1x8xf32>
    %c0_13 = arith.constant 0 : index
    %c0_14 = arith.constant 0 : index
    %c0_15 = arith.constant 0 : index
    %31 = vector.load %arg4[%c0_13, %c0_14, %c0_15] : memref<2x32x96xf32, #tpu.memory_space<vmem>>, vector<1x32x96xf32>
    %32 = vector.shape_cast %31 : vector<1x32x96xf32> to vector<32x96xf32>
    %cst_16 = arith.constant dense<0.000000e+00> : vector<16x96xf32>
    %33 = tpu.matmul %24, %32, %cst_16 {dimension_numbers = #tpu.dot_dimension_numbers<[1], [0], [0], [1], [0, 0, 1, 1], [], []>} : vector<16x32xf32>, vector<32x96xf32>, vector<16x96xf32> -> vector<16x96xf32>
    %c0_17 = arith.constant 0 : index
    %c0_18 = arith.constant 0 : index
    %c0_19 = arith.constant 0 : index
    %34 = vector.load %arg5[%c0_17, %c0_18, %c0_19] : memref<2x1x96xf32, #tpu.memory_space<vmem>>, vector<1x1x96xf32>
    %35 = vector.shape_cast %34 : vector<1x1x96xf32> to vector<1x96xf32>
    %36 = vector.broadcast %35 : vector<1x96xf32> to vector<16x96xf32>
    %37 = arith.addf %33, %36 : vector<16x96xf32>
    %c0_20 = arith.constant 0 : index
    %c0_21 = arith.constant 0 : index
    %c0_22 = arith.constant 0 : index
    %38 = vector.load %arg6[%c0_20, %c0_21, %c0_22] : memref<2x32x32xf32, #tpu.memory_space<vmem>>, vector<1x32x32xf32>
    %39 = vector.shape_cast %38 : vector<1x32x32xf32> to vector<32x32xf32>
    %cst_23 = arith.constant 0.000000e+00 : f32
    %40 = vector.broadcast %cst_23 : f32 to vector<16x32xf32>
    %41 = vector.extract_strided_slice %37 {offsets = [0, 0], sizes = [16, 8], strides = [1, 1]} : vector<16x96xf32> to vector<16x8xf32>
    %42 = vector.shape_cast %41 : vector<16x8xf32> to vector<2x8x8xf32>
    %43 = vector.extract_strided_slice %37 {offsets = [0, 32], sizes = [16, 8], strides = [1, 1]} : vector<16x96xf32> to vector<16x8xf32>
    %44 = vector.shape_cast %43 : vector<16x8xf32> to vector<2x8x8xf32>
    %45 = vector.extract_strided_slice %37 {offsets = [0, 64], sizes = [16, 8], strides = [1, 1]} : vector<16x96xf32> to vector<16x8xf32>
    %46 = vector.shape_cast %45 : vector<16x8xf32> to vector<2x8x8xf32>
    %cst_24 = arith.constant dense<0.000000e+00> : vector<2x8x8xf32>
    %47 = tpu.matmul %42, %44, %cst_24 {dimension_numbers = #tpu.dot_dimension_numbers<[2], [2], [1], [1], [0, 0, 0, 1, 1, 1], [0], [0]>} : vector<2x8x8xf32>, vector<2x8x8xf32>, vector<2x8x8xf32> -> vector<2x8x8xf32>
    %cst_25 = arith.constant 0.353553385 : f32
    %48 = vector.broadcast %cst_25 : f32 to vector<2x8x8xf32>
    %49 = arith.mulf %47, %48 : vector<2x8x8xf32>
    %50 = vector.broadcast %30 : vector<2x1x8xf32> to vector<2x8x8xf32>
    %51 = arith.addf %49, %50 : vector<2x8x8xf32>
    %cst_26 = arith.constant dense<0xFF800000> : vector<2x8xf32>
    %52 = vector.multi_reduction <maximumf>, %51, %cst_26 [2] : vector<2x8x8xf32> to vector<2x8xf32>
    %53 = vector.shape_cast %52 : vector<2x8xf32> to vector<2x8x1xf32>
    %54 = vector.broadcast %53 : vector<2x8x1xf32> to vector<2x8x8xf32>
    %55 = arith.subf %51, %54 : vector<2x8x8xf32>
    %56 = math.exp %55 : vector<2x8x8xf32>
    %cst_27 = arith.constant dense<0.000000e+00> : vector<2x8xf32>
    %57 = vector.multi_reduction <add>, %56, %cst_27 [2] : vector<2x8x8xf32> to vector<2x8xf32>
    %58 = vector.shape_cast %57 : vector<2x8xf32> to vector<2x8x1xf32>
    %59 = vector.broadcast %58 : vector<2x8x1xf32> to vector<2x8x8xf32>
    %60 = arith.divf %56, %59 : vector<2x8x8xf32>
    %cst_28 = arith.constant dense<0.000000e+00> : vector<2x8x8xf32>
    %61 = tpu.matmul %60, %46, %cst_28 {dimension_numbers = #tpu.dot_dimension_numbers<[2], [1], [1], [2], [0, 0, 0, 1, 1, 2], [0], [0]>} : vector<2x8x8xf32>, vector<2x8x8xf32>, vector<2x8x8xf32> -> vector<2x8x8xf32>
    %62 = vector.shape_cast %61 : vector<2x8x8xf32> to vector<16x8xf32>
    %63 = vector.extract_strided_slice %39 {offsets = [0, 0], sizes = [8, 32], strides = [1, 1]} : vector<32x32xf32> to vector<8x32xf32>
    %cst_29 = arith.constant dense<0.000000e+00> : vector<16x32xf32>
    %64 = tpu.matmul %62, %63, %cst_29 {dimension_numbers = #tpu.dot_dimension_numbers<[1], [0], [0], [1], [0, 0, 1, 1], [], []>} : vector<16x8xf32>, vector<8x32xf32>, vector<16x32xf32> -> vector<16x32xf32>
    %65 = arith.addf %40, %64 : vector<16x32xf32>
    %66 = vector.extract_strided_slice %37 {offsets = [0, 8], sizes = [16, 8], strides = [1, 1]} : vector<16x96xf32> to vector<16x8xf32>
    %67 = vector.shape_cast %66 : vector<16x8xf32> to vector<2x8x8xf32>
    %68 = vector.extract_strided_slice %37 {offsets = [0, 40], sizes = [16, 8], strides = [1, 1]} : vector<16x96xf32> to vector<16x8xf32>
    %69 = vector.shape_cast %68 : vector<16x8xf32> to vector<2x8x8xf32>
    %70 = vector.extract_strided_slice %37 {offsets = [0, 72], sizes = [16, 8], strides = [1, 1]} : vector<16x96xf32> to vector<16x8xf32>
    %71 = vector.shape_cast %70 : vector<16x8xf32> to vector<2x8x8xf32>
    %cst_30 = arith.constant dense<0.000000e+00> : vector<2x8x8xf32>
    %72 = tpu.matmul %67, %69, %cst_30 {dimension_numbers = #tpu.dot_dimension_numbers<[2], [2], [1], [1], [0, 0, 0, 1, 1, 1], [0], [0]>} : vector<2x8x8xf32>, vector<2x8x8xf32>, vector<2x8x8xf32> -> vector<2x8x8xf32>
    %cst_31 = arith.constant 0.353553385 : f32
    %73 = vector.broadcast %cst_31 : f32 to vector<2x8x8xf32>
    %74 = arith.mulf %72, %73 : vector<2x8x8xf32>
    %75 = vector.broadcast %30 : vector<2x1x8xf32> to vector<2x8x8xf32>
    %76 = arith.addf %74, %75 : vector<2x8x8xf32>
    %cst_32 = arith.constant dense<0xFF800000> : vector<2x8xf32>
    %77 = vector.multi_reduction <maximumf>, %76, %cst_32 [2] : vector<2x8x8xf32> to vector<2x8xf32>
    %78 = vector.shape_cast %77 : vector<2x8xf32> to vector<2x8x1xf32>
    %79 = vector.broadcast %78 : vector<2x8x1xf32> to vector<2x8x8xf32>
    %80 = arith.subf %76, %79 : vector<2x8x8xf32>
    %81 = math.exp %80 : vector<2x8x8xf32>
    %cst_33 = arith.constant dense<0.000000e+00> : vector<2x8xf32>
    %82 = vector.multi_reduction <add>, %81, %cst_33 [2] : vector<2x8x8xf32> to vector<2x8xf32>
    %83 = vector.shape_cast %82 : vector<2x8xf32> to vector<2x8x1xf32>
    %84 = vector.broadcast %83 : vector<2x8x1xf32> to vector<2x8x8xf32>
    %85 = arith.divf %81, %84 : vector<2x8x8xf32>
    %cst_34 = arith.constant dense<0.000000e+00> : vector<2x8x8xf32>
    %86 = tpu.matmul %85, %71, %cst_34 {dimension_numbers = #tpu.dot_dimension_numbers<[2], [1], [1], [2], [0, 0, 0, 1, 1, 2], [0], [0]>} : vector<2x8x8xf32>, vector<2x8x8xf32>, vector<2x8x8xf32> -> vector<2x8x8xf32>
    %87 = vector.shape_cast %86 : vector<2x8x8xf32> to vector<16x8xf32>
    %88 = vector.extract_strided_slice %39 {offsets = [8, 0], sizes = [8, 32], strides = [1, 1]} : vector<32x32xf32> to vector<8x32xf32>
    %cst_35 = arith.constant dense<0.000000e+00> : vector<16x32xf32>
    %89 = tpu.matmul %87, %88, %cst_35 {dimension_numbers = #tpu.dot_dimension_numbers<[1], [0], [0], [1], [0, 0, 1, 1], [], []>} : vector<16x8xf32>, vector<8x32xf32>, vector<16x32xf32> -> vector<16x32xf32>
    %90 = arith.addf %65, %89 : vector<16x32xf32>
    %91 = vector.extract_strided_slice %37 {offsets = [0, 16], sizes = [16, 8], strides = [1, 1]} : vector<16x96xf32> to vector<16x8xf32>
    %92 = vector.shape_cast %91 : vector<16x8xf32> to vector<2x8x8xf32>
    %93 = vector.extract_strided_slice %37 {offsets = [0, 48], sizes = [16, 8], strides = [1, 1]} : vector<16x96xf32> to vector<16x8xf32>
    %94 = vector.shape_cast %93 : vector<16x8xf32> to vector<2x8x8xf32>
    %95 = vector.extract_strided_slice %37 {offsets = [0, 80], sizes = [16, 8], strides = [1, 1]} : vector<16x96xf32> to vector<16x8xf32>
    %96 = vector.shape_cast %95 : vector<16x8xf32> to vector<2x8x8xf32>
    %cst_36 = arith.constant dense<0.000000e+00> : vector<2x8x8xf32>
    %97 = tpu.matmul %92, %94, %cst_36 {dimension_numbers = #tpu.dot_dimension_numbers<[2], [2], [1], [1], [0, 0, 0, 1, 1, 1], [0], [0]>} : vector<2x8x8xf32>, vector<2x8x8xf32>, vector<2x8x8xf32> -> vector<2x8x8xf32>
    %cst_37 = arith.constant 0.353553385 : f32
    %98 = vector.broadcast %cst_37 : f32 to vector<2x8x8xf32>
    %99 = arith.mulf %97, %98 : vector<2x8x8xf32>
    %100 = vector.broadcast %30 : vector<2x1x8xf32> to vector<2x8x8xf32>
    %101 = arith.addf %99, %100 : vector<2x8x8xf32>
    %cst_38 = arith.constant dense<0xFF800000> : vector<2x8xf32>
    %102 = vector.multi_reduction <maximumf>, %101, %cst_38 [2] : vector<2x8x8xf32> to vector<2x8xf32>
    %103 = vector.shape_cast %102 : vector<2x8xf32> to vector<2x8x1xf32>
    %104 = vector.broadcast %103 : vector<2x8x1xf32> to vector<2x8x8xf32>
    %105 = arith.subf %101, %104 : vector<2x8x8xf32>
    %106 = math.exp %105 : vector<2x8x8xf32>
    %cst_39 = arith.constant dense<0.000000e+00> : vector<2x8xf32>
    %107 = vector.multi_reduction <add>, %106, %cst_39 [2] : vector<2x8x8xf32> to vector<2x8xf32>
    %108 = vector.shape_cast %107 : vector<2x8xf32> to vector<2x8x1xf32>
    %109 = vector.broadcast %108 : vector<2x8x1xf32> to vector<2x8x8xf32>
    %110 = arith.divf %106, %109 : vector<2x8x8xf32>
    %cst_40 = arith.constant dense<0.000000e+00> : vector<2x8x8xf32>
    %111 = tpu.matmul %110, %96, %cst_40 {dimension_numbers = #tpu.dot_dimension_numbers<[2], [1], [1], [2], [0, 0, 0, 1, 1, 2], [0], [0]>} : vector<2x8x8xf32>, vector<2x8x8xf32>, vector<2x8x8xf32> -> vector<2x8x8xf32>
    %112 = vector.shape_cast %111 : vector<2x8x8xf32> to vector<16x8xf32>
    %113 = vector.extract_strided_slice %39 {offsets = [16, 0], sizes = [8, 32], strides = [1, 1]} : vector<32x32xf32> to vector<8x32xf32>
    %cst_41 = arith.constant dense<0.000000e+00> : vector<16x32xf32>
    %114 = tpu.matmul %112, %113, %cst_41 {dimension_numbers = #tpu.dot_dimension_numbers<[1], [0], [0], [1], [0, 0, 1, 1], [], []>} : vector<16x8xf32>, vector<8x32xf32>, vector<16x32xf32> -> vector<16x32xf32>
    %115 = arith.addf %90, %114 : vector<16x32xf32>
    %116 = vector.extract_strided_slice %37 {offsets = [0, 24], sizes = [16, 8], strides = [1, 1]} : vector<16x96xf32> to vector<16x8xf32>
    %117 = vector.shape_cast %116 : vector<16x8xf32> to vector<2x8x8xf32>
    %118 = vector.extract_strided_slice %37 {offsets = [0, 56], sizes = [16, 8], strides = [1, 1]} : vector<16x96xf32> to vector<16x8xf32>
    %119 = vector.shape_cast %118 : vector<16x8xf32> to vector<2x8x8xf32>
    %120 = vector.extract_strided_slice %37 {offsets = [0, 88], sizes = [16, 8], strides = [1, 1]} : vector<16x96xf32> to vector<16x8xf32>
    %121 = vector.shape_cast %120 : vector<16x8xf32> to vector<2x8x8xf32>
    %cst_42 = arith.constant dense<0.000000e+00> : vector<2x8x8xf32>
    %122 = tpu.matmul %117, %119, %cst_42 {dimension_numbers = #tpu.dot_dimension_numbers<[2], [2], [1], [1], [0, 0, 0, 1, 1, 1], [0], [0]>} : vector<2x8x8xf32>, vector<2x8x8xf32>, vector<2x8x8xf32> -> vector<2x8x8xf32>
    %cst_43 = arith.constant 0.353553385 : f32
    %123 = vector.broadcast %cst_43 : f32 to vector<2x8x8xf32>
    %124 = arith.mulf %122, %123 : vector<2x8x8xf32>
    %125 = vector.broadcast %30 : vector<2x1x8xf32> to vector<2x8x8xf32>
    %126 = arith.addf %124, %125 : vector<2x8x8xf32>
    %cst_44 = arith.constant dense<0xFF800000> : vector<2x8xf32>
    %127 = vector.multi_reduction <maximumf>, %126, %cst_44 [2] : vector<2x8x8xf32> to vector<2x8xf32>
    %128 = vector.shape_cast %127 : vector<2x8xf32> to vector<2x8x1xf32>
    %129 = vector.broadcast %128 : vector<2x8x1xf32> to vector<2x8x8xf32>
    %130 = arith.subf %126, %129 : vector<2x8x8xf32>
    %131 = math.exp %130 : vector<2x8x8xf32>
    %cst_45 = arith.constant dense<0.000000e+00> : vector<2x8xf32>
    %132 = vector.multi_reduction <add>, %131, %cst_45 [2] : vector<2x8x8xf32> to vector<2x8xf32>
    %133 = vector.shape_cast %132 : vector<2x8xf32> to vector<2x8x1xf32>
    %134 = vector.broadcast %133 : vector<2x8x1xf32> to vector<2x8x8xf32>
    %135 = arith.divf %131, %134 : vector<2x8x8xf32>
    %cst_46 = arith.constant dense<0.000000e+00> : vector<2x8x8xf32>
    %136 = tpu.matmul %135, %121, %cst_46 {dimension_numbers = #tpu.dot_dimension_numbers<[2], [1], [1], [2], [0, 0, 0, 1, 1, 2], [0], [0]>} : vector<2x8x8xf32>, vector<2x8x8xf32>, vector<2x8x8xf32> -> vector<2x8x8xf32>
    %137 = vector.shape_cast %136 : vector<2x8x8xf32> to vector<16x8xf32>
    %138 = vector.extract_strided_slice %39 {offsets = [24, 0], sizes = [8, 32], strides = [1, 1]} : vector<32x32xf32> to vector<8x32xf32>
    %cst_47 = arith.constant dense<0.000000e+00> : vector<16x32xf32>
    %139 = tpu.matmul %137, %138, %cst_47 {dimension_numbers = #tpu.dot_dimension_numbers<[1], [0], [0], [1], [0, 0, 1, 1], [], []>} : vector<16x8xf32>, vector<8x32xf32>, vector<16x32xf32> -> vector<16x32xf32>
    %140 = arith.addf %115, %139 : vector<16x32xf32>
    %c0_48 = arith.constant 0 : index
    %c0_49 = arith.constant 0 : index
    %c0_50 = arith.constant 0 : index
    %141 = vector.load %arg7[%c0_48, %c0_49, %c0_50] : memref<2x1x32xf32, #tpu.memory_space<vmem>>, vector<1x1x32xf32>
    %142 = vector.shape_cast %141 : vector<1x1x32xf32> to vector<1x32xf32>
    %143 = vector.broadcast %142 : vector<1x32xf32> to vector<16x32xf32>
    %144 = arith.addf %140, %143 : vector<16x32xf32>
    %145 = arith.addf %24, %144 : vector<16x32xf32>
    %c0_51 = arith.constant 0 : index
    %c0_52 = arith.constant 0 : index
    %c0_53 = arith.constant 0 : index
    %146 = vector.load %arg8[%c0_51, %c0_52, %c0_53] : memref<2x1x32xf32, #tpu.memory_space<vmem>>, vector<1x1x32xf32>
    %147 = vector.shape_cast %146 : vector<1x1x32xf32> to vector<1x32xf32>
    %c0_54 = arith.constant 0 : index
    %c0_55 = arith.constant 0 : index
    %c0_56 = arith.constant 0 : index
    %148 = vector.load %arg9[%c0_54, %c0_55, %c0_56] : memref<2x1x32xf32, #tpu.memory_space<vmem>>, vector<1x1x32xf32>
    %149 = vector.shape_cast %148 : vector<1x1x32xf32> to vector<1x32xf32>
    %cst_57 = arith.constant dense<0.000000e+00> : vector<16xf32>
    %150 = vector.multi_reduction <add>, %145, %cst_57 [1] : vector<16x32xf32> to vector<16xf32>
    %151 = vector.shape_cast %150 : vector<16xf32> to vector<16x1xf32>
    %cst_58 = arith.constant 3.200000e+01 : f32
    %152 = vector.broadcast %cst_58 : f32 to vector<16x1xf32>
    %153 = arith.divf %151, %152 : vector<16x1xf32>
    %154 = vector.broadcast %153 : vector<16x1xf32> to vector<16x32xf32>
    %155 = arith.subf %145, %154 : vector<16x32xf32>
    %156 = arith.mulf %155, %155 : vector<16x32xf32>
    %cst_59 = arith.constant dense<0.000000e+00> : vector<16xf32>
    %157 = vector.multi_reduction <add>, %156, %cst_59 [1] : vector<16x32xf32> to vector<16xf32>
    %158 = vector.shape_cast %157 : vector<16xf32> to vector<16x1xf32>
    %cst_60 = arith.constant 3.200000e+01 : f32
    %159 = vector.broadcast %cst_60 : f32 to vector<16x1xf32>
    %160 = arith.divf %158, %159 : vector<16x1xf32>
    %161 = vector.broadcast %153 : vector<16x1xf32> to vector<16x32xf32>
    %162 = arith.subf %145, %161 : vector<16x32xf32>
    %cst_61 = arith.constant 9.99999996E-13 : f32
    %163 = vector.broadcast %cst_61 : f32 to vector<16x1xf32>
    %164 = arith.addf %160, %163 : vector<16x1xf32>
    %165 = math.rsqrt %164 : vector<16x1xf32>
    %166 = vector.broadcast %165 : vector<16x1xf32> to vector<16x32xf32>
    %167 = arith.mulf %162, %166 : vector<16x32xf32>
    %168 = vector.broadcast %147 : vector<1x32xf32> to vector<16x32xf32>
    %169 = arith.mulf %167, %168 : vector<16x32xf32>
    %170 = vector.broadcast %149 : vector<1x32xf32> to vector<16x32xf32>
    %171 = arith.addf %169, %170 : vector<16x32xf32>
    %c0_62 = arith.constant 0 : index
    %c0_63 = arith.constant 0 : index
    %c0_64 = arith.constant 0 : index
    %172 = vector.load %arg10[%c0_62, %c0_63, %c0_64] : memref<2x32x64xf32, #tpu.memory_space<vmem>>, vector<1x32x64xf32>
    %173 = vector.shape_cast %172 : vector<1x32x64xf32> to vector<32x64xf32>
    %cst_65 = arith.constant dense<0.000000e+00> : vector<16x64xf32>
    %174 = tpu.matmul %171, %173, %cst_65 {dimension_numbers = #tpu.dot_dimension_numbers<[1], [0], [0], [1], [0, 0, 1, 1], [], []>} : vector<16x32xf32>, vector<32x64xf32>, vector<16x64xf32> -> vector<16x64xf32>
    %c0_66 = arith.constant 0 : index
    %c0_67 = arith.constant 0 : index
    %c0_68 = arith.constant 0 : index
    %175 = vector.load %arg11[%c0_66, %c0_67, %c0_68] : memref<2x1x64xf32, #tpu.memory_space<vmem>>, vector<1x1x64xf32>
    %176 = vector.shape_cast %175 : vector<1x1x64xf32> to vector<1x64xf32>
    %177 = vector.broadcast %176 : vector<1x64xf32> to vector<16x64xf32>
    %178 = arith.addf %174, %177 : vector<16x64xf32>
    %cst_69 = arith.constant 5.000000e-01 : f32
    %179 = vector.broadcast %cst_69 : f32 to vector<16x64xf32>
    %180 = arith.mulf %179, %178 : vector<16x64xf32>
    %cst_70 = arith.constant 0.707106769 : f32
    %181 = vector.broadcast %cst_70 : f32 to vector<16x64xf32>
    %182 = arith.mulf %178, %181 : vector<16x64xf32>
    %cst_71 = arith.constant 0.000000e+00 : f32
    %183 = vector.broadcast %cst_71 : f32 to vector<16x64xf32>
    %184 = arith.cmpf oge, %182, %183 : vector<16x64xf32>
    %cst_72 = arith.constant 1.000000e+00 : f32
    %cst_73 = arith.constant -1.000000e+00 : f32
    %185 = vector.broadcast %cst_72 : f32 to vector<16x64xf32>
    %186 = vector.broadcast %cst_73 : f32 to vector<16x64xf32>
    %187 = arith.select %184, %185, %186 : vector<16x64xi1>, vector<16x64xf32>
    %188 = math.absf %182 : vector<16x64xf32>
    %cst_74 = arith.constant 0.327591091 : f32
    %189 = vector.broadcast %cst_74 : f32 to vector<16x64xf32>
    %190 = arith.mulf %189, %188 : vector<16x64xf32>
    %cst_75 = arith.constant 1.000000e+00 : f32
    %191 = vector.broadcast %cst_75 : f32 to vector<16x64xf32>
    %192 = arith.addf %191, %190 : vector<16x64xf32>
    %cst_76 = arith.constant 1.000000e+00 : f32
    %193 = vector.broadcast %cst_76 : f32 to vector<16x64xf32>
    %194 = arith.divf %193, %192 : vector<16x64xf32>
    %cst_77 = arith.constant 1.06140542 : f32
    %195 = vector.broadcast %cst_77 : f32 to vector<16x64xf32>
    %196 = arith.mulf %195, %194 : vector<16x64xf32>
    %cst_78 = arith.constant -1.45315206 : f32
    %197 = vector.broadcast %cst_78 : f32 to vector<16x64xf32>
    %198 = arith.addf %196, %197 : vector<16x64xf32>
    %199 = arith.mulf %198, %194 : vector<16x64xf32>
    %cst_79 = arith.constant 1.42141378 : f32
    %200 = vector.broadcast %cst_79 : f32 to vector<16x64xf32>
    %201 = arith.addf %199, %200 : vector<16x64xf32>
    %202 = arith.mulf %201, %194 : vector<16x64xf32>
    %cst_80 = arith.constant -0.284496725 : f32
    %203 = vector.broadcast %cst_80 : f32 to vector<16x64xf32>
    %204 = arith.addf %202, %203 : vector<16x64xf32>
    %205 = arith.mulf %204, %194 : vector<16x64xf32>
    %cst_81 = arith.constant 0.254829586 : f32
    %206 = vector.broadcast %cst_81 : f32 to vector<16x64xf32>
    %207 = arith.addf %205, %206 : vector<16x64xf32>
    %208 = arith.mulf %207, %194 : vector<16x64xf32>
    %cst_82 = arith.constant 0.000000e+00 : f32
    %209 = vector.broadcast %cst_82 : f32 to vector<16x64xf32>
    %210 = arith.subf %209, %188 : vector<16x64xf32>
    %211 = arith.mulf %210, %188 : vector<16x64xf32>
    %212 = math.exp %211 : vector<16x64xf32>
    %213 = arith.mulf %208, %212 : vector<16x64xf32>
    %cst_83 = arith.constant 1.000000e+00 : f32
    %214 = vector.broadcast %cst_83 : f32 to vector<16x64xf32>
    %215 = arith.subf %214, %213 : vector<16x64xf32>
    %216 = arith.mulf %187, %215 : vector<16x64xf32>
    %cst_84 = arith.constant 1.000000e+00 : f32
    %217 = vector.broadcast %cst_84 : f32 to vector<16x64xf32>
    %218 = arith.addf %217, %216 : vector<16x64xf32>
    %219 = arith.mulf %180, %218 : vector<16x64xf32>
    %c0_85 = arith.constant 0 : index
    %c0_86 = arith.constant 0 : index
    %c0_87 = arith.constant 0 : index
    %220 = vector.load %arg12[%c0_85, %c0_86, %c0_87] : memref<2x64x32xf32, #tpu.memory_space<vmem>>, vector<1x64x32xf32>
    %221 = vector.shape_cast %220 : vector<1x64x32xf32> to vector<64x32xf32>
    %cst_88 = arith.constant dense<0.000000e+00> : vector<16x32xf32>
    %222 = tpu.matmul %219, %221, %cst_88 {dimension_numbers = #tpu.dot_dimension_numbers<[1], [0], [0], [1], [0, 0, 1, 1], [], []>} : vector<16x64xf32>, vector<64x32xf32>, vector<16x32xf32> -> vector<16x32xf32>
    %c0_89 = arith.constant 0 : index
    %c0_90 = arith.constant 0 : index
    %c0_91 = arith.constant 0 : index
    %223 = vector.load %arg13[%c0_89, %c0_90, %c0_91] : memref<2x1x32xf32, #tpu.memory_space<vmem>>, vector<1x1x32xf32>
    %224 = vector.shape_cast %223 : vector<1x1x32xf32> to vector<1x32xf32>
    %225 = vector.broadcast %224 : vector<1x32xf32> to vector<16x32xf32>
    %226 = arith.addf %222, %225 : vector<16x32xf32>
    %227 = arith.addf %171, %226 : vector<16x32xf32>
    %c0_92 = arith.constant 0 : index
    %c0_93 = arith.constant 0 : index
    %c0_94 = arith.constant 0 : index
    %228 = vector.load %arg14[%c0_92, %c0_93, %c0_94] : memref<2x1x32xf32, #tpu.memory_space<vmem>>, vector<1x1x32xf32>
    %229 = vector.shape_cast %228 : vector<1x1x32xf32> to vector<1x32xf32>
    %c0_95 = arith.constant 0 : index
    %c0_96 = arith.constant 0 : index
    %c0_97 = arith.constant 0 : index
    %230 = vector.load %arg15[%c0_95, %c0_96, %c0_97] : memref<2x1x32xf32, #tpu.memory_space<vmem>>, vector<1x1x32xf32>
    %231 = vector.shape_cast %230 : vector<1x1x32xf32> to vector<1x32xf32>
    %cst_98 = arith.constant dense<0.000000e+00> : vector<16xf32>
    %232 = vector.multi_reduction <add>, %227, %cst_98 [1] : vector<16x32xf32> to vector<16xf32>
    %233 = vector.shape_cast %232 : vector<16xf32> to vector<16x1xf32>
    %cst_99 = arith.constant 3.200000e+01 : f32
    %234 = vector.broadcast %cst_99 : f32 to vector<16x1xf32>
    %235 = arith.divf %233, %234 : vector<16x1xf32>
    %236 = vector.broadcast %235 : vector<16x1xf32> to vector<16x32xf32>
    %237 = arith.subf %227, %236 : vector<16x32xf32>
    %238 = arith.mulf %237, %237 : vector<16x32xf32>
    %cst_100 = arith.constant dense<0.000000e+00> : vector<16xf32>
    %239 = vector.multi_reduction <add>, %238, %cst_100 [1] : vector<16x32xf32> to vector<16xf32>
    %240 = vector.shape_cast %239 : vector<16xf32> to vector<16x1xf32>
    %cst_101 = arith.constant 3.200000e+01 : f32
    %241 = vector.broadcast %cst_101 : f32 to vector<16x1xf32>
    %242 = arith.divf %240, %241 : vector<16x1xf32>
    %243 = vector.broadcast %235 : vector<16x1xf32> to vector<16x32xf32>
    %244 = arith.subf %227, %243 : vector<16x32xf32>
    %cst_102 = arith.constant 9.99999996E-13 : f32
    %245 = vector.broadcast %cst_102 : f32 to vector<16x1xf32>
    %246 = arith.addf %242, %245 : vector<16x1xf32>
    %247 = math.rsqrt %246 : vector<16x1xf32>
    %248 = vector.broadcast %247 : vector<16x1xf32> to vector<16x32xf32>
    %249 = arith.mulf %244, %248 : vector<16x32xf32>
    %250 = vector.broadcast %229 : vector<1x32xf32> to vector<16x32xf32>
    %251 = arith.mulf %249, %250 : vector<16x32xf32>
    %252 = vector.broadcast %231 : vector<1x32xf32> to vector<16x32xf32>
    %253 = arith.addf %251, %252 : vector<16x32xf32>
    %c1 = arith.constant 1 : index
    %c0_103 = arith.constant 0 : index
    %c0_104 = arith.constant 0 : index
    %254 = vector.load %arg4[%c1, %c0_103, %c0_104] : memref<2x32x96xf32, #tpu.memory_space<vmem>>, vector<1x32x96xf32>
    %255 = vector.shape_cast %254 : vector<1x32x96xf32> to vector<32x96xf32>
    %cst_105 = arith.constant dense<0.000000e+00> : vector<16x96xf32>
    %256 = tpu.matmul %253, %255, %cst_105 {dimension_numbers = #tpu.dot_dimension_numbers<[1], [0], [0], [1], [0, 0, 1, 1], [], []>} : vector<16x32xf32>, vector<32x96xf32>, vector<16x96xf32> -> vector<16x96xf32>
    %c1_106 = arith.constant 1 : index
    %c0_107 = arith.constant 0 : index
    %c0_108 = arith.constant 0 : index
    %257 = vector.load %arg5[%c1_106, %c0_107, %c0_108] : memref<2x1x96xf32, #tpu.memory_space<vmem>>, vector<1x1x96xf32>
    %258 = vector.shape_cast %257 : vector<1x1x96xf32> to vector<1x96xf32>
    %259 = vector.broadcast %258 : vector<1x96xf32> to vector<16x96xf32>
    %260 = arith.addf %256, %259 : vector<16x96xf32>
    %c1_109 = arith.constant 1 : index
    %c0_110 = arith.constant 0 : index
    %c0_111 = arith.constant 0 : index
    %261 = vector.load %arg6[%c1_109, %c0_110, %c0_111] : memref<2x32x32xf32, #tpu.memory_space<vmem>>, vector<1x32x32xf32>
    %262 = vector.shape_cast %261 : vector<1x32x32xf32> to vector<32x32xf32>
    %cst_112 = arith.constant 0.000000e+00 : f32
    %263 = vector.broadcast %cst_112 : f32 to vector<16x32xf32>
    %264 = vector.extract_strided_slice %260 {offsets = [0, 0], sizes = [16, 8], strides = [1, 1]} : vector<16x96xf32> to vector<16x8xf32>
    %265 = vector.shape_cast %264 : vector<16x8xf32> to vector<2x8x8xf32>
    %266 = vector.extract_strided_slice %260 {offsets = [0, 32], sizes = [16, 8], strides = [1, 1]} : vector<16x96xf32> to vector<16x8xf32>
    %267 = vector.shape_cast %266 : vector<16x8xf32> to vector<2x8x8xf32>
    %268 = vector.extract_strided_slice %260 {offsets = [0, 64], sizes = [16, 8], strides = [1, 1]} : vector<16x96xf32> to vector<16x8xf32>
    %269 = vector.shape_cast %268 : vector<16x8xf32> to vector<2x8x8xf32>
    %cst_113 = arith.constant dense<0.000000e+00> : vector<2x8x8xf32>
    %270 = tpu.matmul %265, %267, %cst_113 {dimension_numbers = #tpu.dot_dimension_numbers<[2], [2], [1], [1], [0, 0, 0, 1, 1, 1], [0], [0]>} : vector<2x8x8xf32>, vector<2x8x8xf32>, vector<2x8x8xf32> -> vector<2x8x8xf32>
    %cst_114 = arith.constant 0.353553385 : f32
    %271 = vector.broadcast %cst_114 : f32 to vector<2x8x8xf32>
    %272 = arith.mulf %270, %271 : vector<2x8x8xf32>
    %273 = vector.broadcast %30 : vector<2x1x8xf32> to vector<2x8x8xf32>
    %274 = arith.addf %272, %273 : vector<2x8x8xf32>
    %cst_115 = arith.constant dense<0xFF800000> : vector<2x8xf32>
    %275 = vector.multi_reduction <maximumf>, %274, %cst_115 [2] : vector<2x8x8xf32> to vector<2x8xf32>
    %276 = vector.shape_cast %275 : vector<2x8xf32> to vector<2x8x1xf32>
    %277 = vector.broadcast %276 : vector<2x8x1xf32> to vector<2x8x8xf32>
    %278 = arith.subf %274, %277 : vector<2x8x8xf32>
    %279 = math.exp %278 : vector<2x8x8xf32>
    %cst_116 = arith.constant dense<0.000000e+00> : vector<2x8xf32>
    %280 = vector.multi_reduction <add>, %279, %cst_116 [2] : vector<2x8x8xf32> to vector<2x8xf32>
    %281 = vector.shape_cast %280 : vector<2x8xf32> to vector<2x8x1xf32>
    %282 = vector.broadcast %281 : vector<2x8x1xf32> to vector<2x8x8xf32>
    %283 = arith.divf %279, %282 : vector<2x8x8xf32>
    %cst_117 = arith.constant dense<0.000000e+00> : vector<2x8x8xf32>
    %284 = tpu.matmul %283, %269, %cst_117 {dimension_numbers = #tpu.dot_dimension_numbers<[2], [1], [1], [2], [0, 0, 0, 1, 1, 2], [0], [0]>} : vector<2x8x8xf32>, vector<2x8x8xf32>, vector<2x8x8xf32> -> vector<2x8x8xf32>
    %285 = vector.shape_cast %284 : vector<2x8x8xf32> to vector<16x8xf32>
    %286 = vector.extract_strided_slice %262 {offsets = [0, 0], sizes = [8, 32], strides = [1, 1]} : vector<32x32xf32> to vector<8x32xf32>
    %cst_118 = arith.constant dense<0.000000e+00> : vector<16x32xf32>
    %287 = tpu.matmul %285, %286, %cst_118 {dimension_numbers = #tpu.dot_dimension_numbers<[1], [0], [0], [1], [0, 0, 1, 1], [], []>} : vector<16x8xf32>, vector<8x32xf32>, vector<16x32xf32> -> vector<16x32xf32>
    %288 = arith.addf %263, %287 : vector<16x32xf32>
    %289 = vector.extract_strided_slice %260 {offsets = [0, 8], sizes = [16, 8], strides = [1, 1]} : vector<16x96xf32> to vector<16x8xf32>
    %290 = vector.shape_cast %289 : vector<16x8xf32> to vector<2x8x8xf32>
    %291 = vector.extract_strided_slice %260 {offsets = [0, 40], sizes = [16, 8], strides = [1, 1]} : vector<16x96xf32> to vector<16x8xf32>
    %292 = vector.shape_cast %291 : vector<16x8xf32> to vector<2x8x8xf32>
    %293 = vector.extract_strided_slice %260 {offsets = [0, 72], sizes = [16, 8], strides = [1, 1]} : vector<16x96xf32> to vector<16x8xf32>
    %294 = vector.shape_cast %293 : vector<16x8xf32> to vector<2x8x8xf32>
    %cst_119 = arith.constant dense<0.000000e+00> : vector<2x8x8xf32>
    %295 = tpu.matmul %290, %292, %cst_119 {dimension_numbers = #tpu.dot_dimension_numbers<[2], [2], [1], [1], [0, 0, 0, 1, 1, 1], [0], [0]>} : vector<2x8x8xf32>, vector<2x8x8xf32>, vector<2x8x8xf32> -> vector<2x8x8xf32>
    %cst_120 = arith.constant 0.353553385 : f32
    %296 = vector.broadcast %cst_120 : f32 to vector<2x8x8xf32>
    %297 = arith.mulf %295, %296 : vector<2x8x8xf32>
    %298 = vector.broadcast %30 : vector<2x1x8xf32> to vector<2x8x8xf32>
    %299 = arith.addf %297, %298 : vector<2x8x8xf32>
    %cst_121 = arith.constant dense<0xFF800000> : vector<2x8xf32>
    %300 = vector.multi_reduction <maximumf>, %299, %cst_121 [2] : vector<2x8x8xf32> to vector<2x8xf32>
    %301 = vector.shape_cast %300 : vector<2x8xf32> to vector<2x8x1xf32>
    %302 = vector.broadcast %301 : vector<2x8x1xf32> to vector<2x8x8xf32>
    %303 = arith.subf %299, %302 : vector<2x8x8xf32>
    %304 = math.exp %303 : vector<2x8x8xf32>
    %cst_122 = arith.constant dense<0.000000e+00> : vector<2x8xf32>
    %305 = vector.multi_reduction <add>, %304, %cst_122 [2] : vector<2x8x8xf32> to vector<2x8xf32>
    %306 = vector.shape_cast %305 : vector<2x8xf32> to vector<2x8x1xf32>
    %307 = vector.broadcast %306 : vector<2x8x1xf32> to vector<2x8x8xf32>
    %308 = arith.divf %304, %307 : vector<2x8x8xf32>
    %cst_123 = arith.constant dense<0.000000e+00> : vector<2x8x8xf32>
    %309 = tpu.matmul %308, %294, %cst_123 {dimension_numbers = #tpu.dot_dimension_numbers<[2], [1], [1], [2], [0, 0, 0, 1, 1, 2], [0], [0]>} : vector<2x8x8xf32>, vector<2x8x8xf32>, vector<2x8x8xf32> -> vector<2x8x8xf32>
    %310 = vector.shape_cast %309 : vector<2x8x8xf32> to vector<16x8xf32>
    %311 = vector.extract_strided_slice %262 {offsets = [8, 0], sizes = [8, 32], strides = [1, 1]} : vector<32x32xf32> to vector<8x32xf32>
    %cst_124 = arith.constant dense<0.000000e+00> : vector<16x32xf32>
    %312 = tpu.matmul %310, %311, %cst_124 {dimension_numbers = #tpu.dot_dimension_numbers<[1], [0], [0], [1], [0, 0, 1, 1], [], []>} : vector<16x8xf32>, vector<8x32xf32>, vector<16x32xf32> -> vector<16x32xf32>
    %313 = arith.addf %288, %312 : vector<16x32xf32>
    %314 = vector.extract_strided_slice %260 {offsets = [0, 16], sizes = [16, 8], strides = [1, 1]} : vector<16x96xf32> to vector<16x8xf32>
    %315 = vector.shape_cast %314 : vector<16x8xf32> to vector<2x8x8xf32>
    %316 = vector.extract_strided_slice %260 {offsets = [0, 48], sizes = [16, 8], strides = [1, 1]} : vector<16x96xf32> to vector<16x8xf32>
    %317 = vector.shape_cast %316 : vector<16x8xf32> to vector<2x8x8xf32>
    %318 = vector.extract_strided_slice %260 {offsets = [0, 80], sizes = [16, 8], strides = [1, 1]} : vector<16x96xf32> to vector<16x8xf32>
    %319 = vector.shape_cast %318 : vector<16x8xf32> to vector<2x8x8xf32>
    %cst_125 = arith.constant dense<0.000000e+00> : vector<2x8x8xf32>
    %320 = tpu.matmul %315, %317, %cst_125 {dimension_numbers = #tpu.dot_dimension_numbers<[2], [2], [1], [1], [0, 0, 0, 1, 1, 1], [0], [0]>} : vector<2x8x8xf32>, vector<2x8x8xf32>, vector<2x8x8xf32> -> vector<2x8x8xf32>
    %cst_126 = arith.constant 0.353553385 : f32
    %321 = vector.broadcast %cst_126 : f32 to vector<2x8x8xf32>
    %322 = arith.mulf %320, %321 : vector<2x8x8xf32>
    %323 = vector.broadcast %30 : vector<2x1x8xf32> to vector<2x8x8xf32>
    %324 = arith.addf %322, %323 : vector<2x8x8xf32>
    %cst_127 = arith.constant dense<0xFF800000> : vector<2x8xf32>
    %325 = vector.multi_reduction <maximumf>, %324, %cst_127 [2] : vector<2x8x8xf32> to vector<2x8xf32>
    %326 = vector.shape_cast %325 : vector<2x8xf32> to vector<2x8x1xf32>
    %327 = vector.broadcast %326 : vector<2x8x1xf32> to vector<2x8x8xf32>
    %328 = arith.subf %324, %327 : vector<2x8x8xf32>
    %329 = math.exp %328 : vector<2x8x8xf32>
    %cst_128 = arith.constant dense<0.000000e+00> : vector<2x8xf32>
    %330 = vector.multi_reduction <add>, %329, %cst_128 [2] : vector<2x8x8xf32> to vector<2x8xf32>
    %331 = vector.shape_cast %330 : vector<2x8xf32> to vector<2x8x1xf32>
    %332 = vector.broadcast %331 : vector<2x8x1xf32> to vector<2x8x8xf32>
    %333 = arith.divf %329, %332 : vector<2x8x8xf32>
    %cst_129 = arith.constant dense<0.000000e+00> : vector<2x8x8xf32>
    %334 = tpu.matmul %333, %319, %cst_129 {dimension_numbers = #tpu.dot_dimension_numbers<[2], [1], [1], [2], [0, 0, 0, 1, 1, 2], [0], [0]>} : vector<2x8x8xf32>, vector<2x8x8xf32>, vector<2x8x8xf32> -> vector<2x8x8xf32>
    %335 = vector.shape_cast %334 : vector<2x8x8xf32> to vector<16x8xf32>
    %336 = vector.extract_strided_slice %262 {offsets = [16, 0], sizes = [8, 32], strides = [1, 1]} : vector<32x32xf32> to vector<8x32xf32>
    %cst_130 = arith.constant dense<0.000000e+00> : vector<16x32xf32>
    %337 = tpu.matmul %335, %336, %cst_130 {dimension_numbers = #tpu.dot_dimension_numbers<[1], [0], [0], [1], [0, 0, 1, 1], [], []>} : vector<16x8xf32>, vector<8x32xf32>, vector<16x32xf32> -> vector<16x32xf32>
    %338 = arith.addf %313, %337 : vector<16x32xf32>
    %339 = vector.extract_strided_slice %260 {offsets = [0, 24], sizes = [16, 8], strides = [1, 1]} : vector<16x96xf32> to vector<16x8xf32>
    %340 = vector.shape_cast %339 : vector<16x8xf32> to vector<2x8x8xf32>
    %341 = vector.extract_strided_slice %260 {offsets = [0, 56], sizes = [16, 8], strides = [1, 1]} : vector<16x96xf32> to vector<16x8xf32>
    %342 = vector.shape_cast %341 : vector<16x8xf32> to vector<2x8x8xf32>
    %343 = vector.extract_strided_slice %260 {offsets = [0, 88], sizes = [16, 8], strides = [1, 1]} : vector<16x96xf32> to vector<16x8xf32>
    %344 = vector.shape_cast %343 : vector<16x8xf32> to vector<2x8x8xf32>
    %cst_131 = arith.constant dense<0.000000e+00> : vector<2x8x8xf32>
    %345 = tpu.matmul %340, %342, %cst_131 {dimension_numbers = #tpu.dot_dimension_numbers<[2], [2], [1], [1], [0, 0, 0, 1, 1, 1], [0], [0]>} : vector<2x8x8xf32>, vector<2x8x8xf32>, vector<2x8x8xf32> -> vector<2x8x8xf32>
    %cst_132 = arith.constant 0.353553385 : f32
    %346 = vector.broadcast %cst_132 : f32 to vector<2x8x8xf32>
    %347 = arith.mulf %345, %346 : vector<2x8x8xf32>
    %348 = vector.broadcast %30 : vector<2x1x8xf32> to vector<2x8x8xf32>
    %349 = arith.addf %347, %348 : vector<2x8x8xf32>
    %cst_133 = arith.constant dense<0xFF800000> : vector<2x8xf32>
    %350 = vector.multi_reduction <maximumf>, %349, %cst_133 [2] : vector<2x8x8xf32> to vector<2x8xf32>
    %351 = vector.shape_cast %350 : vector<2x8xf32> to vector<2x8x1xf32>
    %352 = vector.broadcast %351 : vector<2x8x1xf32> to vector<2x8x8xf32>
    %353 = arith.subf %349, %352 : vector<2x8x8xf32>
    %354 = math.exp %353 : vector<2x8x8xf32>
    %cst_134 = arith.constant dense<0.000000e+00> : vector<2x8xf32>
    %355 = vector.multi_reduction <add>, %354, %cst_134 [2] : vector<2x8x8xf32> to vector<2x8xf32>
    %356 = vector.shape_cast %355 : vector<2x8xf32> to vector<2x8x1xf32>
    %357 = vector.broadcast %356 : vector<2x8x1xf32> to vector<2x8x8xf32>
    %358 = arith.divf %354, %357 : vector<2x8x8xf32>
    %cst_135 = arith.constant dense<0.000000e+00> : vector<2x8x8xf32>
    %359 = tpu.matmul %358, %344, %cst_135 {dimension_numbers = #tpu.dot_dimension_numbers<[2], [1], [1], [2], [0, 0, 0, 1, 1, 2], [0], [0]>} : vector<2x8x8xf32>, vector<2x8x8xf32>, vector<2x8x8xf32> -> vector<2x8x8xf32>
    %360 = vector.shape_cast %359 : vector<2x8x8xf32> to vector<16x8xf32>
    %361 = vector.extract_strided_slice %262 {offsets = [24, 0], sizes = [8, 32], strides = [1, 1]} : vector<32x32xf32> to vector<8x32xf32>
    %cst_136 = arith.constant dense<0.000000e+00> : vector<16x32xf32>
    %362 = tpu.matmul %360, %361, %cst_136 {dimension_numbers = #tpu.dot_dimension_numbers<[1], [0], [0], [1], [0, 0, 1, 1], [], []>} : vector<16x8xf32>, vector<8x32xf32>, vector<16x32xf32> -> vector<16x32xf32>
    %363 = arith.addf %338, %362 : vector<16x32xf32>
    %c1_137 = arith.constant 1 : index
    %c0_138 = arith.constant 0 : index
    %c0_139 = arith.constant 0 : index
    %364 = vector.load %arg7[%c1_137, %c0_138, %c0_139] : memref<2x1x32xf32, #tpu.memory_space<vmem>>, vector<1x1x32xf32>
    %365 = vector.shape_cast %364 : vector<1x1x32xf32> to vector<1x32xf32>
    %366 = vector.broadcast %365 : vector<1x32xf32> to vector<16x32xf32>
    %367 = arith.addf %363, %366 : vector<16x32xf32>
    %368 = arith.addf %253, %367 : vector<16x32xf32>
    %c1_140 = arith.constant 1 : index
    %c0_141 = arith.constant 0 : index
    %c0_142 = arith.constant 0 : index
    %369 = vector.load %arg8[%c1_140, %c0_141, %c0_142] : memref<2x1x32xf32, #tpu.memory_space<vmem>>, vector<1x1x32xf32>
    %370 = vector.shape_cast %369 : vector<1x1x32xf32> to vector<1x32xf32>
    %c1_143 = arith.constant 1 : index
    %c0_144 = arith.constant 0 : index
    %c0_145 = arith.constant 0 : index
    %371 = vector.load %arg9[%c1_143, %c0_144, %c0_145] : memref<2x1x32xf32, #tpu.memory_space<vmem>>, vector<1x1x32xf32>
    %372 = vector.shape_cast %371 : vector<1x1x32xf32> to vector<1x32xf32>
    %cst_146 = arith.constant dense<0.000000e+00> : vector<16xf32>
    %373 = vector.multi_reduction <add>, %368, %cst_146 [1] : vector<16x32xf32> to vector<16xf32>
    %374 = vector.shape_cast %373 : vector<16xf32> to vector<16x1xf32>
    %cst_147 = arith.constant 3.200000e+01 : f32
    %375 = vector.broadcast %cst_147 : f32 to vector<16x1xf32>
    %376 = arith.divf %374, %375 : vector<16x1xf32>
    %377 = vector.broadcast %376 : vector<16x1xf32> to vector<16x32xf32>
    %378 = arith.subf %368, %377 : vector<16x32xf32>
    %379 = arith.mulf %378, %378 : vector<16x32xf32>
    %cst_148 = arith.constant dense<0.000000e+00> : vector<16xf32>
    %380 = vector.multi_reduction <add>, %379, %cst_148 [1] : vector<16x32xf32> to vector<16xf32>
    %381 = vector.shape_cast %380 : vector<16xf32> to vector<16x1xf32>
    %cst_149 = arith.constant 3.200000e+01 : f32
    %382 = vector.broadcast %cst_149 : f32 to vector<16x1xf32>
    %383 = arith.divf %381, %382 : vector<16x1xf32>
    %384 = vector.broadcast %376 : vector<16x1xf32> to vector<16x32xf32>
    %385 = arith.subf %368, %384 : vector<16x32xf32>
    %cst_150 = arith.constant 9.99999996E-13 : f32
    %386 = vector.broadcast %cst_150 : f32 to vector<16x1xf32>
    %387 = arith.addf %383, %386 : vector<16x1xf32>
    %388 = math.rsqrt %387 : vector<16x1xf32>
    %389 = vector.broadcast %388 : vector<16x1xf32> to vector<16x32xf32>
    %390 = arith.mulf %385, %389 : vector<16x32xf32>
    %391 = vector.broadcast %370 : vector<1x32xf32> to vector<16x32xf32>
    %392 = arith.mulf %390, %391 : vector<16x32xf32>
    %393 = vector.broadcast %372 : vector<1x32xf32> to vector<16x32xf32>
    %394 = arith.addf %392, %393 : vector<16x32xf32>
    %c1_151 = arith.constant 1 : index
    %c0_152 = arith.constant 0 : index
    %c0_153 = arith.constant 0 : index
    %395 = vector.load %arg10[%c1_151, %c0_152, %c0_153] : memref<2x32x64xf32, #tpu.memory_space<vmem>>, vector<1x32x64xf32>
    %396 = vector.shape_cast %395 : vector<1x32x64xf32> to vector<32x64xf32>
    %cst_154 = arith.constant dense<0.000000e+00> : vector<16x64xf32>
    %397 = tpu.matmul %394, %396, %cst_154 {dimension_numbers = #tpu.dot_dimension_numbers<[1], [0], [0], [1], [0, 0, 1, 1], [], []>} : vector<16x32xf32>, vector<32x64xf32>, vector<16x64xf32> -> vector<16x64xf32>
    %c1_155 = arith.constant 1 : index
    %c0_156 = arith.constant 0 : index
    %c0_157 = arith.constant 0 : index
    %398 = vector.load %arg11[%c1_155, %c0_156, %c0_157] : memref<2x1x64xf32, #tpu.memory_space<vmem>>, vector<1x1x64xf32>
    %399 = vector.shape_cast %398 : vector<1x1x64xf32> to vector<1x64xf32>
    %400 = vector.broadcast %399 : vector<1x64xf32> to vector<16x64xf32>
    %401 = arith.addf %397, %400 : vector<16x64xf32>
    %cst_158 = arith.constant 5.000000e-01 : f32
    %402 = vector.broadcast %cst_158 : f32 to vector<16x64xf32>
    %403 = arith.mulf %402, %401 : vector<16x64xf32>
    %cst_159 = arith.constant 0.707106769 : f32
    %404 = vector.broadcast %cst_159 : f32 to vector<16x64xf32>
    %405 = arith.mulf %401, %404 : vector<16x64xf32>
    %cst_160 = arith.constant 0.000000e+00 : f32
    %406 = vector.broadcast %cst_160 : f32 to vector<16x64xf32>
    %407 = arith.cmpf oge, %405, %406 : vector<16x64xf32>
    %cst_161 = arith.constant 1.000000e+00 : f32
    %cst_162 = arith.constant -1.000000e+00 : f32
    %408 = vector.broadcast %cst_161 : f32 to vector<16x64xf32>
    %409 = vector.broadcast %cst_162 : f32 to vector<16x64xf32>
    %410 = arith.select %407, %408, %409 : vector<16x64xi1>, vector<16x64xf32>
    %411 = math.absf %405 : vector<16x64xf32>
    %cst_163 = arith.constant 0.327591091 : f32
    %412 = vector.broadcast %cst_163 : f32 to vector<16x64xf32>
    %413 = arith.mulf %412, %411 : vector<16x64xf32>
    %cst_164 = arith.constant 1.000000e+00 : f32
    %414 = vector.broadcast %cst_164 : f32 to vector<16x64xf32>
    %415 = arith.addf %414, %413 : vector<16x64xf32>
    %cst_165 = arith.constant 1.000000e+00 : f32
    %416 = vector.broadcast %cst_165 : f32 to vector<16x64xf32>
    %417 = arith.divf %416, %415 : vector<16x64xf32>
    %cst_166 = arith.constant 1.06140542 : f32
    %418 = vector.broadcast %cst_166 : f32 to vector<16x64xf32>
    %419 = arith.mulf %418, %417 : vector<16x64xf32>
    %cst_167 = arith.constant -1.45315206 : f32
    %420 = vector.broadcast %cst_167 : f32 to vector<16x64xf32>
    %421 = arith.addf %419, %420 : vector<16x64xf32>
    %422 = arith.mulf %421, %417 : vector<16x64xf32>
    %cst_168 = arith.constant 1.42141378 : f32
    %423 = vector.broadcast %cst_168 : f32 to vector<16x64xf32>
    %424 = arith.addf %422, %423 : vector<16x64xf32>
    %425 = arith.mulf %424, %417 : vector<16x64xf32>
    %cst_169 = arith.constant -0.284496725 : f32
    %426 = vector.broadcast %cst_169 : f32 to vector<16x64xf32>
    %427 = arith.addf %425, %426 : vector<16x64xf32>
    %428 = arith.mulf %427, %417 : vector<16x64xf32>
    %cst_170 = arith.constant 0.254829586 : f32
    %429 = vector.broadcast %cst_170 : f32 to vector<16x64xf32>
    %430 = arith.addf %428, %429 : vector<16x64xf32>
    %431 = arith.mulf %430, %417 : vector<16x64xf32>
    %cst_171 = arith.constant 0.000000e+00 : f32
    %432 = vector.broadcast %cst_171 : f32 to vector<16x64xf32>
    %433 = arith.subf %432, %411 : vector<16x64xf32>
    %434 = arith.mulf %433, %411 : vector<16x64xf32>
    %435 = math.exp %434 : vector<16x64xf32>
    %436 = arith.mulf %431, %435 : vector<16x64xf32>
    %cst_172 = arith.constant 1.000000e+00 : f32
    %437 = vector.broadcast %cst_172 : f32 to vector<16x64xf32>
    %438 = arith.subf %437, %436 : vector<16x64xf32>
    %439 = arith.mulf %410, %438 : vector<16x64xf32>
    %cst_173 = arith.constant 1.000000e+00 : f32
    %440 = vector.broadcast %cst_173 : f32 to vector<16x64xf32>
    %441 = arith.addf %440, %439 : vector<16x64xf32>
    %442 = arith.mulf %403, %441 : vector<16x64xf32>
    %c1_174 = arith.constant 1 : index
    %c0_175 = arith.constant 0 : index
    %c0_176 = arith.constant 0 : index
    %443 = vector.load %arg12[%c1_174, %c0_175, %c0_176] : memref<2x64x32xf32, #tpu.memory_space<vmem>>, vector<1x64x32xf32>
    %444 = vector.shape_cast %443 : vector<1x64x32xf32> to vector<64x32xf32>
    %cst_177 = arith.constant dense<0.000000e+00> : vector<16x32xf32>
    %445 = tpu.matmul %442, %444, %cst_177 {dimension_numbers = #tpu.dot_dimension_numbers<[1], [0], [0], [1], [0, 0, 1, 1], [], []>} : vector<16x64xf32>, vector<64x32xf32>, vector<16x32xf32> -> vector<16x32xf32>
    %c1_178 = arith.constant 1 : index
    %c0_179 = arith.constant 0 : index
    %c0_180 = arith.constant 0 : index
    %446 = vector.load %arg13[%c1_178, %c0_179, %c0_180] : memref<2x1x32xf32, #tpu.memory_space<vmem>>, vector<1x1x32xf32>
    %447 = vector.shape_cast %446 : vector<1x1x32xf32> to vector<1x32xf32>
    %448 = vector.broadcast %447 : vector<1x32xf32> to vector<16x32xf32>
    %449 = arith.addf %445, %448 : vector<16x32xf32>
    %450 = arith.addf %394, %449 : vector<16x32xf32>
    %c1_181 = arith.constant 1 : index
    %c0_182 = arith.constant 0 : index
    %c0_183 = arith.constant 0 : index
    %451 = vector.load %arg14[%c1_181, %c0_182, %c0_183] : memref<2x1x32xf32, #tpu.memory_space<vmem>>, vector<1x1x32xf32>
    %452 = vector.shape_cast %451 : vector<1x1x32xf32> to vector<1x32xf32>
    %c1_184 = arith.constant 1 : index
    %c0_185 = arith.constant 0 : index
    %c0_186 = arith.constant 0 : index
    %453 = vector.load %arg15[%c1_184, %c0_185, %c0_186] : memref<2x1x32xf32, #tpu.memory_space<vmem>>, vector<1x1x32xf32>
    %454 = vector.shape_cast %453 : vector<1x1x32xf32> to vector<1x32xf32>
    %cst_187 = arith.constant dense<0.000000e+00> : vector<16xf32>
    %455 = vector.multi_reduction <add>, %450, %cst_187 [1] : vector<16x32xf32> to vector<16xf32>
    %456 = vector.shape_cast %455 : vector<16xf32> to vector<16x1xf32>
    %cst_188 = arith.constant 3.200000e+01 : f32
    %457 = vector.broadcast %cst_188 : f32 to vector<16x1xf32>
    %458 = arith.divf %456, %457 : vector<16x1xf32>
    %459 = vector.broadcast %458 : vector<16x1xf32> to vector<16x32xf32>
    %460 = arith.subf %450, %459 : vector<16x32xf32>
    %461 = arith.mulf %460, %460 : vector<16x32xf32>
    %cst_189 = arith.constant dense<0.000000e+00> : vector<16xf32>
    %462 = vector.multi_reduction <add>, %461, %cst_189 [1] : vector<16x32xf32> to vector<16xf32>
    %463 = vector.shape_cast %462 : vector<16xf32> to vector<16x1xf32>
    %cst_190 = arith.constant 3.200000e+01 : f32
    %464 = vector.broadcast %cst_190 : f32 to vector<16x1xf32>
    %465 = arith.divf %463, %464 : vector<16x1xf32>
    %466 = vector.broadcast %458 : vector<16x1xf32> to vector<16x32xf32>
    %467 = arith.subf %450, %466 : vector<16x32xf32>
    %cst_191 = arith.constant 9.99999996E-13 : f32
    %468 = vector.broadcast %cst_191 : f32 to vector<16x1xf32>
    %469 = arith.addf %465, %468 : vector<16x1xf32>
    %470 = math.rsqrt %469 : vector<16x1xf32>
    %471 = vector.broadcast %470 : vector<16x1xf32> to vector<16x32xf32>
    %472 = arith.mulf %467, %471 : vector<16x32xf32>
    %473 = vector.broadcast %452 : vector<1x32xf32> to vector<16x32xf32>
    %474 = arith.mulf %472, %473 : vector<16x32xf32>
    %475 = vector.broadcast %454 : vector<1x32xf32> to vector<16x32xf32>
    %476 = arith.addf %474, %475 : vector<16x32xf32>
    %477 = vector.shape_cast %476 : vector<16x32xf32> to vector<2x8x32xf32>
    %c0_192 = arith.constant 0 : index
    %c0_193 = arith.constant 0 : index
    %c0_194 = arith.constant 0 : index
    %478 = vector.load %arg16[%c0_192, %c0_193, %c0_194] : memref<2x8x32xf32, #tpu.memory_space<vmem>>, vector<2x8x32xf32>
    tpu.vector_store %arg16[%c0_192, %c0_193, %c0_194], %477 {strides = array<i32>} : memref<2x8x32xf32, #tpu.memory_space<vmem>>, vector<2x8x32xf32>,
    %479 = vector.shape_cast %25 : vector<2x8xf32> to vector<2x8x1xf32>
    %480 = vector.broadcast %479 : vector<2x8x1xf32> to vector<2x8x32xf32>
    %481 = arith.mulf %477, %480 : vector<2x8x32xf32>
    %cst_195 = arith.constant dense<0.000000e+00> : vector<2x32xf32>
    %482 = vector.multi_reduction <add>, %481, %cst_195 [1] : vector<2x8x32xf32> to vector<2x32xf32>
    %cst_196 = arith.constant dense<0.000000e+00> : vector<2xf32>
    %483 = vector.multi_reduction <add>, %25, %cst_196 [1] : vector<2x8xf32> to vector<2xf32>
    %484 = vector.shape_cast %483 : vector<2xf32> to vector<2x1xf32>
    %cst_197 = arith.constant 9.99999971E-10 : f32
    %485 = vector.broadcast %cst_197 : f32 to vector<2x1xf32>
    %486 = arith.maximumf %484, %485 : vector<2x1xf32>
    %487 = vector.broadcast %486 : vector<2x1xf32> to vector<2x32xf32>
    %488 = arith.divf %482, %487 : vector<2x32xf32>
    %c0_198 = arith.constant 0 : index
    %c0_199 = arith.constant 0 : index
    %489 = vector.load %arg17[%c0_198, %c0_199] : memref<2x32xf32, #tpu.memory_space<vmem>>, vector<2x32xf32>
    tpu.vector_store %arg17[%c0_198, %c0_199], %488 {strides = array<i32>} : memref<2x32xf32, #tpu.memory_space<vmem>>, vector<2x32xf32>,
    return
  }
}

</mosaic_0001>

<bundles_post_ra>
// kernel: model_for_se_forward.1
= control target key start
LH: loop header
LB: loop body
LE: loop exit
PB: predicated region body
PF: predicated region fallthrough
CT: control target
= control target key end

     0   :  { %s5949_s0 = inlined_call_operand.vmem [shape: f32[16,32], index: 0, kind: input, shape index: {}]   ;;  %s5950_s1 = inlined_call_operand.vmem [shape: f32[2,8], index: 1, kind: input, shape index: {}]   ;;  %s5951_s2 = inlined_call_operand.vmem [shape: f32[1,32], index: 2, kind: input, shape index: {}]   ;;  %s5952_s3 = inlined_call_operand.vmem [shape: f32[1,32], index: 3, kind: input, shape index: {}]   ;;  %s5953_s4 = inlined_call_operand.vmem [shape: f32[2,32,96], index: 4, kind: input, shape index: {}]   ;;  %s5954_s5 = inlined_call_operand.vmem [shape: f32[2,1,96], index: 5, kind: input, shape index: {}]   ;;  %s5955_s6 = inlined_call_operand.vmem [shape: f32[2,32,32], index: 6, kind: input, shape index: {}]   ;;  %s5956_s7 = inlined_call_operand.vmem [shape: f32[2,1,32], index: 7, kind: input, shape index: {}]   ;;  %s5957_s8 = inlined_call_operand.vmem [shape: f32[2,1,32], index: 8, kind: input, shape index: {}]   ;;  %s5958_s9 = inlined_call_operand.vmem [shape: f32[2,1,32], index: 9, kind: input, shape index: {}]   ;;  %s5959_s10 = inlined_call_operand.vmem [shape: f32[2,32,64], index: 10, kind: input, shape index: {}]   ;;  %s5960_s11 = inlined_call_operand.vmem [shape: f32[2,1,64], index: 11, kind: input, shape index: {}]   ;;  %s5961_s12 = inlined_call_operand.vmem [shape: f32[2,64,32], index: 12, kind: input, shape index: {}]   ;;  %s5962_s13 = inlined_call_operand.vmem [shape: f32[2,1,32], index: 13, kind: input, shape index: {}]   ;;  %s5963_s14 = inlined_call_operand.vmem [shape: f32[2,1,32], index: 14, kind: input, shape index: {}]   ;;  %s5964_s15 = inlined_call_operand.vmem [shape: f32[2,1,32], index: 15, kind: input, shape index: {}]   ;;  %s5965_s16 = inlined_call_operand.hbm [shape: f32[2,8,32], index: 16, kind: output, shape index: {0}]   ;;  %s5966_s17 = inlined_call_operand.hbm [shape: f32[2,32], index: 17, kind: output, shape index: {1}]  }
   0x1   :  { %5975 = sst [smem:[#allocation8_spill]] %s5949_s0 }
   0x2   :  { %5976 = sst [smem:[#allocation9_spill]] %s5950_s1 }
   0x3   :  { %23 = vsyncpa [#allocation3], 0  ;;  %s5977_s26 = sld [smem:[#allocation8_spill]]  ;;  %vm61_vm0 = vcmask 261120  }
   0x9   :  { %v57_v0 = vld [vmem:[%s5977_s26] sm:$0xff]  ;;  %v58_v1 = vld [vmem:[%s5977_s26 + $0x8] sm:$0xff] }
   0xa   :  { %24 = vsyncpa [#allocation5], 0  ;;  %v62_v2 = vsel %vm61_vm0, %v57_v0, 0.0  ;;  %v65_v3 = vsel %vm61_vm0, %v58_v1, 0.0  ;;  %v131_v14 = vld [vmem:[%s5953_s4] sm:$0xff]  ;;  %v132_v15 = vld [vmem:[%s5953_s4 + $0x8] sm:$0xff]  ;;  %v112_v46 = vlaneseq }
   0xb   :  { %63 = vadd.xlane.f32.xlu0 %v62_v2  ;;  %v133_v16 = vld [vmem:[%s5953_s4 + $0x10] sm:$0xff]  ;;  %v4976_v17 = vpack.c.bf16 %v132_v15, %v131_v14  ;;  %v134_v18 = vld [vmem:[%s5953_s4 + $0x18] sm:$0xff]  ;;  %v4440_v27 = vld [vmem:[%s5951_s2] ss:$0 sm:$0xff]  ;;  %v5224_v36 = vmov 0.0   ;;  %vm5225_vm1 = vmmov 0  }
   0xc   :  { %v4980_v19 = vpack.c.bf16 %v134_v18, %v133_v16  ;;  %v4441_v29 = vld [vmem:[%s5952_s3] ss:$0 sm:$0xff]  ;;  %4715 = vmatprep.subr.mxu0 %v5224_v36  ;;  %4717 = vmatprep.mubr.msk.f32.mxu0 %vm5225_vm1, %v5224_v36  ;;  %s5226_s26 = smov 96   ;;  %vm230_vm2 = vcmask 64512   ;;  %v5227_v44 = vmov 1966171168  }
   0xd   :  { %4977 = vmatprep.subr.bf16.mxu1 %v4976_v17  ;;  %v4442_v37 = vld [vmem:[%s5954_s5] ss:$0 sm:$0xff]  ;;  %v110_v45 = vunpack.c.l.s4 %v5227_v44  ;;  %s5978_s29 = sld [smem:[#allocation9_spill]]  ;;  %v5401_v50 = vshrl.u32 %v112_v46, 7  ;;  %s5228_s0 = smov 88   ;;  %vm2116_vm5 = vcmask 523264  }
   0xe   :  { %4979 = vmatpush3.bf16.msra.mxu1 %v4976_v17  ;;  %s5229_s30 = smov 120   ;;  %s5230_s18 = smov 80   ;;  %vm4389_vm8 = vcmask 58368  }
   0xf   :  { %66 = vadd.xlane.f32.xlu0 %v65_v3  ;;  %4981 = vmatprep.subr.bf16.mxu1 %v4980_v19  ;;  %v111_v49 = vunpack.c.0.s8 %v110_v45  ;;  %v5405_v58 = vsub.s32 0, %v5401_v50  ;;  %s5231_s19 = smov 64   ;;  %s5232_s1 = smov 56  }
  0x10   :  { %s5233_s20 = smov 112   ;;  %s5234_s21 = smov 48  }
  0x11   :  { %v114_v52 = vsub.s32 %v111_v49, %v5401_v50  ;;  %s5973_s22 = smov 72   ;;  %s5971_s23 = smov 104  }
  0x12   :  { %4983 = vmatpush3.bf16.msra.mxu1 %v4980_v19  ;;  %s5969_s24 = smov 40  }
  0x13   :  { %4705 = vmatprep.subr.mxu1 %v5224_v36  ;;  %v105_v47 = vld [vmem:[%s5978_s29] sm:$0x3] }
  0x14   :  { %v106_v48 = vsub.f32 1.0, %v105_v47 }
  0x16   :  { %v107_v51 = vmul.f32 -10000.0, %v106_v48 }
  0x18   :  { %v115_v53 = vrot.slane %v107_v51, %v114_v52 }
  0x1a   :  { %v116_v54 = vcombine.high %v115_v53, %v115_v53 }
  0x1c   :  { %v130_v55 = vrot.slane %v116_v54, %v114_v52 }
  0x1e   :  { %v5408_v59 = vrot.slane %v130_v55, %v5405_v58 }
  0x98   :  { %v64_v4 = vpop.xlane.xlu0 %63 }
  0x99   :  { %v69_v5 = vmul.f32 0.03125, %v64_v4 }
  0x9b   :  { %v71_v6 = vsub.f32 %v57_v0, %v69_v5 }
  0x9c   :  { %v67_v7 = vpop.xlane.xlu0 %66 }
  0x9d   :  { %v70_v8 = vmul.f32 0.03125, %v67_v7  ;;  %v73_v9 = vmul.f32 %v71_v6, %v71_v6 }
  0x9f   :  { %v72_v10 = vsub.f32 %v58_v1, %v70_v8  ;;  %v75_v11 = vsel %vm61_vm0, %v73_v9, 0.0  ;;  %v123_v1 = vrot.slane %v115_v53, %v114_v52 }
  0xa0   :  { %76 = vadd.xlane.f32.xlu1 %v75_v11 }
  0xa1   :  { %v74_v12 = vmul.f32 %v72_v10, %v72_v10  ;;  %v5417_v3 = vrot.slane %v123_v1, %v5405_v58 }
  0xa3   :  { %v78_v13 = vsel %vm61_vm0, %v74_v12, 0.0 }
  0xa4   :  { %79 = vadd.xlane.f32.xlu1 %v78_v13 }
 0x12d   :  { %v77_v20 = vpop.xlane.xlu1 %76 }
 0x12e   :  { %v81_v21 = vmul.f32 0.03125, %v77_v20 }
 0x130   :  { %v83_v22 = vadd.f32 1e-12, %v81_v21 }
 0x131   :  { %v80_v23 = vpop.xlane.xlu1 %79 }
 0x132   :  { %5071 = vrsqrt.f32 %v83_v22  ;;  %v82_v24 = vmul.f32 0.03125, %v80_v23 }
 0x134   :  { %v84_v25 = vadd.f32 1e-12, %v82_v24 }
 0x136   :  { %5073 = vrsqrt.f32 %v84_v25 }
 0x13c   :  { %v5072_v26 = vpop.eup %5071 }
 0x13d   :  { %v87_v28 = vmul.f32 %v5072_v26, %v71_v6 }
 0x13f   :  { %v95_v30 = vmul.f32 %v4440_v27, %v87_v28 }
 0x140   :  { %v5074_v31 = vpop.eup %5073 }
 0x141   :  { %v88_v32 = vmul.f32 %v5074_v31, %v72_v10  ;;  %v5361_v33 = vadd.f32 %v4441_v29, %v95_v30 }
 0x143   :  { %v96_v34 = vmul.f32 %v4440_v27, %v88_v32  ;;  %4702 = vmatprep.mubr.msk.f32.mxu1 %vm61_vm0, %v5361_v33 }
 0x145   :  { %v5365_v35 = vadd.f32 %v4441_v29, %v96_v34 }
 0x147   :  { %4703 = vmatmul.mubr.msk.f32.vlgmr.msra.gmra.mrb[0].mxu1 %vm61_vm0, %v5365_v35 }
 0x148   :  { %4707 = vmatprep.mubr.msk.f32.mxu1 %vm5225_vm1, %v5224_v36 }
 0x21a   :  { %v4704_v38 = vpop.f32.mrb[0].mxu1 }
 0x21b   :  { %v5378_v39 = vadd.f32 %v4704_v38, %v4442_v37  ;;  %v214_v40 = vpop.f32.mrb[1].mxu1 }
 0x21c   :  { %v5380_v41 = vadd.f32 %v4442_v37, %v214_v40 }
 0x21d   :  { %306 = vrot.lane.b32.xlu1 %v5378_v39, %s5226_s26 }
 0x21e   :  { %228 = vrot.lane.b32.xlu0 %v5380_v41, %s5226_s26 }
 0x28f   :  { %v307_v43 = vpop.permute.xlu1 %306 }
 0x290   :  { %v229_v42 = vpop.permute.xlu0 %228 }
 0x291   :  { %4706 = vmatpush3.xpose.msk.msra.mxu1 %vm230_vm2, %v229_v42 }
 0x292   :  { %4710 = vmatprep.subr.mxu1 %v5224_v36 }
 0x294   :  { %4708 = vmatmul.mubr.msk.f32.vlgmr.msra.gmra.mrb[2].mxu1 %vm230_vm2, %v5380_v41 }
 0x295   :  { %4711 = vmatpush3.xpose.msk.msra.mxu1 %vm230_vm2, %v307_v43  ;;  %4712 = vmatprep.mubr.msk.f32.mxu1 %vm5225_vm1, %v5224_v36 }
 0x296   :  { %4720 = vmatprep.subr.mxu1 %v5224_v36 }
 0x298   :  { %4713 = vmatmul.mubr.msk.f32.vlgmr.msra.gmra.mrb[4].mxu1 %vm230_vm2, %v5378_v39 }
 0x299   :  { %4722 = vmatprep.mubr.msk.f32.mxu1 %vm5225_vm1, %v5224_v36 }
 0x367   :  { %v301_v56 = vpop.f32.mrb[2].mxu1 }
 0x368   :  { %v4709_v57 = vpop.f32.mrb[3].mxu1  ;;  %v382_v2 = vmul.f32 0.35355338, %v301_v56 }
 0x36a   :  { %v394_v4 = vadd.f32 %v5417_v3, %v382_v2 }
 0x36b   :  { %v378_v60 = vpop.f32.mrb[4].mxu1 }
 0x36c   :  { %v383_v61 = vmul.f32 0.35355338, %v378_v60  ;;  %v4714_v62 = vpop.f32.mrb[5].mxu1  ;;  %v396_v5 = vsel %vm230_vm2, %v394_v4, -inf }
 0x36e   :  { %v395_v63 = vadd.f32 %v5408_v59, %v383_v61 }
 0x370   :  { %v399_v0 = vsel %vm230_vm2, %v395_v63, -inf }
 0x371   :  { %400 = vmax.xlane.f32.xlu1 %v399_v0 }
 0x382   :  { %650 = vrot.lane.b32.xlu1 %v5378_v39, %s5228_s0 }
 0x386   :  { %648 = vrot.lane.b32.xlu1 %v5378_v39, %s5229_s30 }
 0x3aa   :  { %397 = vmax.xlane.f32.xlu1 %v396_v5 }
 0x3bb   :  { %572 = vrot.lane.b32.xlu1 %v5380_v41, %s5228_s0 }
 0x3bf   :  { %570 = vrot.lane.b32.xlu1 %v5380_v41, %s5229_s30 }
 0x3c3   :  { %1068 = vrot.lane.b32.xlu1 %v5380_v41, %s5230_s18 }
 0x3fe   :  { %v401_v6 = vpop.xlane.xlu1 %400 }
 0x3ff   :  { %v403_v7 = vsub.f32 %v395_v63, %v401_v6 }
 0x401   :  { %v406_v8 = vmul.f32 1.442695, %v403_v7 }
 0x402   :  { %v651_v11 = vpop.permute.xlu1 %650 }
 0x403   :  { %5075 = vpow2.f32 %v406_v8 }
 0x406   :  { %v649_v12 = vpop.permute.xlu1 %648 }
 0x40d   :  { %v5076_v9 = vpop.eup %5075 }
 0x40e   :  { %v411_v10 = vsel %vm230_vm2, %v5076_v9, 0.0 }
 0x40f   :  { %412 = vadd.xlane.f32.xlu0 %v411_v10 }
 0x425   :  { %494 = vrot.lane.b32.xlu0 %v5378_v39, %s5231_s19 }
 0x437   :  { %v398_v13 = vpop.xlane.xlu1 %397 }
 0x438   :  { %v402_v14 = vsub.f32 %v394_v4, %v398_v13 }
 0x43a   :  { %v404_v15 = vmul.f32 1.442695, %v402_v14 }
 0x43b   :  { %v573_v25 = vpop.permute.xlu1 %572 }
 0x43c   :  { %5077 = vpow2.f32 %v404_v15 }
 0x43f   :  { %v571_v27 = vpop.permute.xlu1 %570 }
 0x443   :  { %v1069_v54 = vpop.permute.xlu1 %1068 }
 0x446   :  { %v5078_v16 = vpop.eup %5077 }
 0x447   :  { %v408_v17 = vsel %vm230_vm2, %v5078_v16, 0.0 }
 0x448   :  { %409 = vadd.xlane.f32.xlu0 %v408_v17 }
 0x45e   :  { %418 = vrot.lane.b32.xlu0 %v5380_v41, %s5231_s19 }
 0x49c   :  { %v413_v18 = vpop.xlane.xlu0 %412 }
 0x49d   :  { %5079 = vrcp.f32 %v413_v18 }
 0x4a0   :  { %v495_v19 = vpop.permute.xlu0 %494 }
 0x4a1   :  { %4721 = vmatpush3.msra.mxu1 %v495_v19 }
 0x4a2   :  { %4730 = vmatprep.subr.mxu1 %v5224_v36 }
 0x4a7   :  { %v5080_v20 = vpop.eup %5079 }
 0x4a8   :  { %v417_v21 = vmul.f32 %v5080_v20, %v5076_v9 }
 0x4aa   :  { %4723 = vmatmul.mubr.msk.f32.vlgmr.msra.gmra.mrb[6].mxu1 %vm230_vm2, %v417_v21 }
 0x4ab   :  { %4731 = vmatpush3.xpose.msk.msra.mxu1 %vm230_vm2, %v651_v11  ;;  %4732 = vmatprep.mubr.msk.f32.mxu1 %vm5225_vm1, %v5224_v36 }
 0x4ac   :  { %4740 = vmatprep.subr.mxu1 %v5224_v36 }
 0x4ae   :  { %4733 = vmatmul.mubr.msk.f32.vlgmr.msra.gmra.mrb[8].mxu1 %vm230_vm2, %v649_v12 }
 0x4af   :  { %4742 = vmatprep.mubr.msk.f32.mxu1 %vm5225_vm1, %v5224_v36 }
 0x4d5   :  { %v410_v22 = vpop.xlane.xlu0 %409 }
 0x4d6   :  { %5081 = vrcp.f32 %v410_v22  ;;  %v224_v22 = vld [vmem:[%s5955_s6 + $0x8] sm:$0xff] }
 0x4d9   :  { %v419_v23 = vpop.permute.xlu0 %418 }
 0x4da   :  { %4716 = vmatpush3.msra.mxu0 %v419_v23  ;;  %v223_v23 = vld [vmem:[%s5955_s6] sm:$0xff] }
 0x4db   :  { %4725 = vmatprep.subr.mxu0 %v5224_v36 }
 0x4e0   :  { %v5082_v24 = vpop.eup %5081 }
 0x4e1   :  { %v415_v26 = vmul.f32 %v5082_v24, %v5078_v16 }
 0x4e3   :  { %4718 = vmatmul.mubr.msk.f32.vlgmr.msra.gmra.mrb[0].mxu0 %vm230_vm2, %v415_v26 }
 0x4e4   :  { %4726 = vmatpush3.xpose.msk.msra.mxu0 %vm230_vm2, %v573_v25  ;;  %4727 = vmatprep.mubr.msk.f32.mxu0 %vm5225_vm1, %v5224_v36 }
 0x4e5   :  { %4735 = vmatprep.subr.mxu0 %v5224_v36 }
 0x4e7   :  { %4728 = vmatmul.mubr.msk.f32.vlgmr.msra.gmra.mrb[2].mxu0 %vm230_vm2, %v571_v27 }
 0x4e8   :  { %4737 = vmatprep.mubr.msk.f32.mxu0 %vm5225_vm1, %v5224_v36 }
 0x57d   :  { %v5451_v28 = vpop.f32.mrb[6].mxu1 }
 0x57e   :  { %v4724_v29 = vpop.f32.mrb[7].mxu1 }
 0x581   :  { %v722_v30 = vpop.f32.mrb[8].mxu1 }
 0x582   :  { %v727_v31 = vmul.f32 0.35355338, %v722_v30  ;;  %v4734_v32 = vpop.f32.mrb[9].mxu1 }
 0x584   :  { %v729_v34 = vadd.f32 %v727_v31, %v5408_v59 }
 0x586   :  { %v733_v37 = vsel %vm230_vm2, %v729_v34, -inf }
 0x587   :  { %734 = vmax.xlane.f32.xlu0 %v733_v37 }
 0x59d   :  { %828 = vrot.lane.b32.xlu0 %v5378_v39, %s5232_s1 }
 0x5a1   :  { %1066 = vrot.lane.b32.xlu0 %v5380_v41, %s5233_s20 }
 0x5a5   :  { %1144 = vrot.lane.b32.xlu0 %v5378_v39, %s5233_s20 }
 0x5b6   :  { %v5461_v38 = vpop.f32.mrb[0].mxu0 }
 0x5b7   :  { %v4719_v40 = vpop.f32.mrb[1].mxu0 }
 0x5ba   :  { %v644_v42 = vpop.f32.mrb[2].mxu0 }
 0x5bb   :  { %v4729_v43 = vpop.f32.mrb[3].mxu0  ;;  %v726_v51 = vmul.f32 0.35355338, %v644_v42 }
 0x5bd   :  { %v728_v52 = vadd.f32 %v726_v51, %v5417_v3 }
 0x5bf   :  { %v730_v53 = vsel %vm230_vm2, %v728_v52, -inf }
 0x614   :  { %v735_v44 = vpop.xlane.xlu0 %734 }
 0x615   :  { %v737_v45 = vsub.f32 %v729_v34, %v735_v44 }
 0x617   :  { %v740_v46 = vmul.f32 1.442695, %v737_v45  ;;  %v225_v45 = vld [vmem:[%s5955_s6 + $0x10] sm:$0xff] }
 0x618   :  { %v829_v47 = vpop.permute.xlu0 %828 }
 0x619   :  { %5083 = vpow2.f32 %v740_v46  ;;  %4741 = vmatpush3.msra.mxu1 %v829_v47 }
 0x61a   :  { %4755 = vmatprep.subr.mxu1 %v5224_v36 }
 0x61c   :  { %v1067_v60 = vpop.permute.xlu0 %1066 }
 0x620   :  { %v1145_v62 = vpop.permute.xlu0 %1144 }
 0x623   :  { %v5084_v48 = vpop.eup %5083 }
 0x624   :  { %v745_v49 = vsel %vm230_vm2, %v5084_v48, 0.0 }
 0x625   :  { %746 = vadd.xlane.f32.xlu1 %v745_v49 }
 0x636   :  { %1146 = vrot.lane.b32.xlu1 %v5378_v39, %s5230_s18 }
 0x65a   :  { %731 = vmax.xlane.f32.xlu1 %v730_v53 }
 0x6b2   :  { %v747_v55 = vpop.xlane.xlu1 %746 }
 0x6b3   :  { %5085 = vrcp.f32 %v747_v55 }
 0x6b6   :  { %v1147_v61 = vpop.permute.xlu1 %1146 }
 0x6bd   :  { %v5086_v56 = vpop.eup %5085 }
 0x6be   :  { %v751_v57 = vmul.f32 %v5086_v56, %v5084_v48 }
 0x6c0   :  { %4743 = vmatmul.mubr.msk.f32.vlgmr.msra.gmra.mrb[10].mxu1 %vm230_vm2, %v751_v57 }
 0x6c1   :  { %4756 = vmatpush3.xpose.msk.msra.mxu1 %vm230_vm2, %v1069_v54  ;;  %4757 = vmatprep.mubr.msk.f32.mxu1 %vm5225_vm1, %v5224_v36 }
 0x6c2   :  { %4760 = vmatprep.subr.mxu1 %v5224_v36 }
 0x6c4   :  { %4758 = vmatmul.mubr.msk.f32.vlgmr.msra.gmra.mrb[12].mxu1 %vm230_vm2, %v1067_v60 }
 0x6c5   :  { %4761 = vmatpush3.xpose.msk.msra.mxu1 %vm230_vm2, %v1147_v61  ;;  %4762 = vmatprep.mubr.msk.f32.mxu1 %vm5225_vm1, %v5224_v36 }
 0x6c6   :  { %4770 = vmatprep.subr.mxu1 %v5224_v36 }
 0x6c8   :  { %4763 = vmatmul.mubr.msk.f32.vlgmr.msra.gmra.mrb[14].mxu1 %vm230_vm2, %v1145_v62 }
 0x6c9   :  { %4772 = vmatprep.mubr.msk.f32.mxu1 %vm5225_vm1, %v5224_v36 }
 0x6e7   :  { %v732_v63 = vpop.xlane.xlu1 %731 }
 0x6e8   :  { %v736_v0 = vsub.f32 %v728_v52, %v732_v63 }
 0x6ea   :  { %v738_v1 = vmul.f32 1.442695, %v736_v0 }
 0x6ec   :  { %5087 = vpow2.f32 %v738_v1 }
 0x6f6   :  { %v5088_v2 = vpop.eup %5087 }
 0x6f7   :  { %v742_v4 = vsel %vm230_vm2, %v5088_v2, 0.0 }
 0x6f8   :  { %743 = vadd.xlane.f32.xlu0 %v742_v4 }
 0x70e   :  { %752 = vrot.lane.b32.xlu0 %v5380_v41, %s5232_s1 }
 0x712   :  { %1324 = vrot.lane.b32.xlu0 %v5378_v39, %s5234_s21 }
 0x716   :  { %1485 = vrot.lane.b32.xlu0 %v5380_v41, %s5973_s22 }
 0x71a   :  { %1563 = vrot.lane.b32.xlu0 %v5378_v39, %s5973_s22 }
 0x71e   :  { %1483 = vrot.lane.b32.xlu0 %v5380_v41, %s5971_s23 }
 0x785   :  { %v744_v5 = vpop.xlane.xlu0 %743 }
 0x786   :  { %5089 = vrcp.f32 %v744_v5 }
 0x789   :  { %v753_v6 = vpop.permute.xlu0 %752 }
 0x78a   :  { %4736 = vmatpush3.msra.mxu0 %v753_v6 }
 0x78b   :  { %4745 = vmatprep.subr.mxu0 %v224_v22 }
 0x78d   :  { %v1325_v7 = vpop.permute.xlu0 %1324 }
 0x78e   :  { %4771 = vmatpush3.msra.mxu1 %v1325_v7 }
 0x78f   :  { %4780 = vmatprep.subr.mxu1 %v5224_v36 }
 0x790   :  { %v5090_v8 = vpop.eup %5089 }
 0x791   :  { %v749_v9 = vmul.f32 %v5090_v8, %v5088_v2  ;;  %v1486_v47 = vpop.permute.xlu0 %1485 }
 0x793   :  { %4738 = vmatmul.mubr.msk.f32.vlgmr.msra.gmra.mrb[4].mxu0 %vm230_vm2, %v749_v9  ;;  %v900_v10 = vpop.f32.mrb[10].mxu1 }
 0x794   :  { %v4744_v11 = vpop.f32.mrb[11].mxu1  ;;  %4746 = vmatpush3.msra.mxu0 %v224_v22 }
 0x795   :  { %4750 = vmatprep.subr.mxu0 %v223_v23  ;;  %v1564_v49 = vpop.permute.xlu0 %1563 }
 0x797   :  { %v1140_v12 = vpop.f32.mrb[12].mxu1 }
 0x798   :  { %v1222_v13 = vmul.f32 0.35355338, %v1140_v12  ;;  %v4759_v14 = vpop.f32.mrb[13].mxu1 }
 0x799   :  { %v1484_v52 = vpop.permute.xlu0 %1483 }
 0x79a   :  { %v1224_v15 = vadd.f32 %v1222_v13, %v5417_v3 }
 0x79b   :  { %v1218_v16 = vpop.f32.mrb[14].mxu1 }
 0x79c   :  { %v1223_v17 = vmul.f32 0.35355338, %v1218_v16  ;;  %v4764_v18 = vpop.f32.mrb[15].mxu1  ;;  %v1226_v19 = vsel %vm230_vm2, %v1224_v15, -inf }
 0x79d   :  { %1227 = vmax.xlane.f32.xlu1 %v1226_v19 }
 0x79e   :  { %v1225_v20 = vadd.f32 %v1223_v17, %v5408_v59 }
 0x7a0   :  { %v1229_v21 = vsel %vm230_vm2, %v1225_v20, -inf }
 0x7a1   :  { %1230 = vmax.xlane.f32.xlu1 %v1229_v21 }
 0x82a   :  { %v1228_v24 = vpop.xlane.xlu1 %1227 }
 0x82b   :  { %v1232_v25 = vsub.f32 %v1224_v15, %v1228_v24  ;;  %v226_v24 = vld [vmem:[%s5955_s6 + $0x18] sm:$0xff] }
 0x82d   :  { %v1234_v26 = vmul.f32 1.442695, %v1232_v25 }
 0x82e   :  { %v1231_v27 = vpop.xlane.xlu1 %1230 }
 0x82f   :  { %5091 = vpow2.f32 %v1234_v26  ;;  %v1233_v29 = vsub.f32 %v1225_v20, %v1231_v27 }
 0x831   :  { %v1236_v30 = vmul.f32 1.442695, %v1233_v29  ;;  %v4477_v29 = vld [vmem:[%s5956_s7] ss:$0 sm:$0xff] }
 0x833   :  { %5093 = vpow2.f32 %v1236_v30 }
 0x839   :  { %v5092_v31 = vpop.eup %5091 }
 0x83a   :  { %v1238_v32 = vsel %vm230_vm2, %v5092_v31, 0.0 }
 0x83b   :  { %1239 = vadd.xlane.f32.xlu1 %v1238_v32 }
 0x83d   :  { %v5094_v34 = vpop.eup %5093 }
 0x83e   :  { %v1241_v37 = vsel %vm230_vm2, %v5094_v34, 0.0 }
 0x83f   :  { %1242 = vadd.xlane.f32.xlu1 %v1241_v37 }
 0x850   :  { %1248 = vrot.lane.b32.xlu1 %v5380_v41, %s5234_s21 }
 0x854   :  { %1561 = vrot.lane.b32.xlu1 %v5378_v39, %s5971_s23 }
 0x866   :  { %v824_v40 = vpop.f32.mrb[4].mxu0 }
 0x867   :  { %v4739_v42 = vpop.f32.mrb[5].mxu0  ;;  %4747 = vmatprep.mubr.msk.f32.mxu0 %vm230_vm2, %v824_v40 }
 0x868   :  { %4748 = vmatmul.mubr.msk.f32.vlgmr.msra.gmra.mrb[6].mxu0 %vm230_vm2, %v900_v10 }
 0x869   :  { %4752 = vmatprep.mubr.msk.f32.mxu0 %vm230_vm2, %v5461_v38  ;;  %4751 = vmatpush3.msra.mxu0 %v223_v23 }
 0x86a   :  { %4765 = vmatprep.subr.mxu0 %v5224_v36 }
 0x870   :  { %4753 = vmatmul.mubr.msk.f32.vlgmr.msra.gmra.mrb[6].mxu0 %vm230_vm2, %v5451_v28 }
 0x871   :  { %4767 = vmatprep.mubr.msk.f32.mxu0 %vm5225_vm1, %v5224_v36 }
 0x8c8   :  { %v1240_v43 = vpop.xlane.xlu1 %1239 }
 0x8c9   :  { %5095 = vrcp.f32 %v1240_v43 }
 0x8cc   :  { %v1243_v44 = vpop.xlane.xlu1 %1242 }
 0x8cd   :  { %5097 = vrcp.f32 %v1243_v44 }
 0x8d0   :  { %v1249_v46 = vpop.permute.xlu1 %1248 }
 0x8d1   :  { %4766 = vmatpush3.msra.mxu0 %v1249_v46 }
 0x8d2   :  { %4775 = vmatprep.subr.mxu0 %v225_v45 }
 0x8d3   :  { %v5096_v38 = vpop.eup %5095 }
 0x8d4   :  { %v1245_v48 = vmul.f32 %v5096_v38, %v5092_v31  ;;  %v1562_v57 = vpop.permute.xlu1 %1561 }
 0x8d6   :  { %4768 = vmatmul.mubr.msk.f32.vlgmr.msra.gmra.mrb[8].mxu0 %vm230_vm2, %v1245_v48 }
 0x8d7   :  { %v5098_v28 = vpop.eup %5097  ;;  %4776 = vmatpush3.msra.mxu0 %v225_v45 }
 0x8d8   :  { %v1247_v51 = vmul.f32 %v5098_v28, %v5094_v34  ;;  %4785 = vmatprep.subr.mxu0 %v5224_v36 }
 0x8da   :  { %4773 = vmatmul.mubr.msk.f32.vlgmr.msra.gmra.mrb[16].mxu1 %vm230_vm2, %v1247_v51 }
 0x8db   :  { %4781 = vmatpush3.xpose.msk.msra.mxu1 %vm230_vm2, %v1486_v47  ;;  %4782 = vmatprep.mubr.msk.f32.mxu1 %vm5225_vm1, %v5224_v36 }
 0x8dc   :  { %4790 = vmatprep.subr.mxu1 %v5224_v36 }
 0x8de   :  { %4783 = vmatmul.mubr.msk.f32.vlgmr.msra.gmra.mrb[18].mxu1 %vm230_vm2, %v1484_v52  ;;  %v1956_v52 = vld [vmem:[%s5959_s10 + $0x8] sm:$0xff] }
 0x8df   :  { %4792 = vmatprep.mubr.msk.f32.mxu1 %vm5225_vm1, %v5224_v36 }
 0x9a9   :  { %v1320_v53 = vpop.f32.mrb[8].mxu0 }
 0x9aa   :  { %v4769_v54 = vpop.f32.mrb[9].mxu0  ;;  %4777 = vmatprep.mubr.msk.f32.mxu0 %vm230_vm2, %v1320_v53 }
 0x9ab   :  { %v1957_v54 = vld [vmem:[%s5959_s10 + $0x10] sm:$0xff] }
 0x9ad   :  { %v1396_v55 = vpop.f32.mrb[16].mxu1 }
 0x9ae   :  { %v4774_v56 = vpop.f32.mrb[17].mxu1  ;;  %4778 = vmatmul.mubr.msk.f32.vlgmr.msra.gmra.mrb[6].mxu0 %vm230_vm2, %v1396_v55  ;;  %v1958_v55 = vld [vmem:[%s5959_s10 + $0x18] sm:$0xff] }
 0x9af   :  { %4786 = vmatpush3.xpose.msk.msra.mxu0 %vm230_vm2, %v1564_v49  ;;  %4787 = vmatprep.mubr.msk.f32.mxu0 %vm5225_vm1, %v5224_v36  ;;  %v4988_v56 = vpack.c.bf16 %v1958_v55, %v1957_v54 }
 0x9b0   :  { %4795 = vmatprep.subr.mxu0 %v5224_v36 }
 0x9b1   :  { %v1557_v60 = vpop.f32.mrb[18].mxu1 }
 0x9b2   :  { %v1639_v61 = vmul.f32 0.35355338, %v1557_v60  ;;  %v4784_v62 = vpop.f32.mrb[19].mxu1  ;;  %4788 = vmatmul.mubr.msk.f32.vlgmr.msra.gmra.mrb[10].mxu0 %vm230_vm2, %v1562_v57 }
 0x9b3   :  { %4797 = vmatprep.mubr.msk.f32.mxu0 %vm5225_vm1, %v5224_v36 }
 0x9b4   :  { %v1641_v63 = vadd.f32 %v1639_v61, %v5417_v3 }
 0x9b6   :  { %v1643_v0 = vsel %vm230_vm2, %v1641_v63, -inf }
 0x9b7   :  { %1644 = vmax.xlane.f32.xlu0 %v1643_v0 }
 0xa44   :  { %v1645_v1 = vpop.xlane.xlu0 %1644 }
 0xa45   :  { %v1649_v2 = vsub.f32 %v1641_v63, %v1645_v1 }
 0xa47   :  { %v1651_v4 = vmul.f32 1.442695, %v1649_v2  ;;  %v4478_v2 = vld [vmem:[%s5957_s8] ss:$0 sm:$0xff] }
 0xa49   :  { %5099 = vpow2.f32 %v1651_v4 }
 0xa53   :  { %v5100_v5 = vpop.eup %5099 }
 0xa54   :  { %v1655_v6 = vsel %vm230_vm2, %v5100_v5, 0.0 }
 0xa55   :  { %1656 = vadd.xlane.f32.xlu0 %v1655_v6 }
 0xa85   :  { %v1635_v7 = vpop.f32.mrb[10].mxu0 }
 0xa86   :  { %v1640_v8 = vmul.f32 0.35355338, %v1635_v7  ;;  %v4789_v9 = vpop.f32.mrb[11].mxu0  ;;  %v4479_v7 = vld [vmem:[%s5958_s9] ss:$0 sm:$0xff] }
 0xa88   :  { %v1642_v10 = vadd.f32 %v1640_v8, %v5408_v59 }
 0xa8a   :  { %v1646_v11 = vsel %vm230_vm2, %v1642_v10, -inf }
 0xa8b   :  { %1647 = vmax.xlane.f32.xlu1 %v1646_v11 }
 0xa9c   :  { %1741 = vrot.lane.b32.xlu1 %v5378_v39, %s5969_s24 }
 0xae2   :  { %v1657_v18 = vpop.xlane.xlu0 %1656 }
 0xb18   :  { %v1648_v12 = vpop.xlane.xlu1 %1647 }
 0xb19   :  { %v1650_v13 = vsub.f32 %v1642_v10, %v1648_v12  ;;  %v2101_v12 = vld [vmem:[%s5961_s12] sm:$0xff] }
 0xb1b   :  { %v1653_v14 = vmul.f32 1.442695, %v1650_v13  ;;  %v2102_v13 = vld [vmem:[%s5961_s12 + $0x8] sm:$0xff] }
 0xb1c   :  { %v1742_v15 = vpop.permute.xlu1 %1741 }
 0xb1d   :  { %5101 = vpow2.f32 %v1653_v14  ;;  %4796 = vmatpush3.msra.mxu0 %v1742_v15  ;;  %v4992_v14 = vpack.c.bf16 %v2102_v13, %v2101_v12  ;;  %v2103_v15 = vld [vmem:[%s5961_s12 + $0x10] sm:$0xff] }
 0xb1e   :  { %5103 = vrcp.f32 %v1657_v18  ;;  %4800 = vmatprep.subr.mxu0 %v226_v24  ;;  %v2105_v18 = vld [vmem:[%s5961_s12 + $0x20] sm:$0xff] }
 0xb27   :  { %v5102_v16 = vpop.eup %5101 }
 0xb28   :  { %v1658_v17 = vsel %vm230_vm2, %v5102_v16, 0.0  ;;  %v5104_v20 = vpop.eup %5103 }
 0xb29   :  { %1659 = vadd.xlane.f32.xlu0 %v1658_v17  ;;  %v1662_v21 = vmul.f32 %v5104_v20, %v5100_v5 }
 0xb3f   :  { %1665 = vrot.lane.b32.xlu0 %v5380_v41, %s5969_s24 }
 0xbb6   :  { %v1660_v19 = vpop.xlane.xlu0 %1659 }
 0xbb7   :  { %5105 = vrcp.f32 %v1660_v19  ;;  %v2106_v19 = vld [vmem:[%s5961_s12 + $0x28] sm:$0xff] }
 0xbb8   :  { %v5000_v20 = vpack.c.bf16 %v2106_v19, %v2105_v18 }
 0xbba   :  { %v1666_v39 = vpop.permute.xlu0 %1665 }
 0xbbb   :  { %4791 = vmatpush3.msra.mxu1 %v1666_v39  ;;  %v2108_v39 = vld [vmem:[%s5961_s12 + $0x38] sm:$0xff] }
 0xbbc   :  { %4793 = vmatmul.mubr.msk.f32.vlgmr.msra.gmra.mrb[20].mxu1 %vm230_vm2, %v1662_v21  ;;  %v2107_v21 = vld [vmem:[%s5961_s12 + $0x30] sm:$0xff] }
 0xbc1   :  { %v5106_v22 = vpop.eup %5105 }
 0xbc2   :  { %v1664_v23 = vmul.f32 %v5106_v22, %v5102_v16  ;;  %v2104_v16 = vld [vmem:[%s5961_s12 + $0x18] sm:$0xff]  ;;  %v5004_v22 = vpack.c.bf16 %v2108_v39, %v2107_v21 }
 0xbc3   :  { %v4996_v17 = vpack.c.bf16 %v2104_v16, %v2103_v15 }
 0xbc4   :  { %4798 = vmatmul.mubr.msk.f32.vlgmr.msra.gmra.mrb[12].mxu0 %vm230_vm2, %v1664_v23  ;;  %v4480_v23 = vld [vmem:[%s5960_s11] ss:$0 sm:$0xff] }
 0xbc5   :  { %4801 = vmatpush3.msra.mxu0 %v226_v24 }
 0xbc6   :  { %4993 = vmatprep.subr.bf16.mxu0 %v4992_v14 }
 0xc8f   :  { %v1737_v41 = vpop.f32.mrb[20].mxu1 }
 0xc90   :  { %v4794_v25 = vpop.f32.mrb[21].mxu1  ;;  %4802 = vmatprep.mubr.msk.f32.mxu0 %vm230_vm2, %v1737_v41 }
 0xc97   :  { %v1813_v26 = vpop.f32.mrb[12].mxu0 }
 0xc98   :  { %v4799_v27 = vpop.f32.mrb[13].mxu0  ;;  %4803 = vmatmul.mubr.msk.f32.vlgmr.msra.gmra.mrb[6].mxu0 %vm230_vm2, %v1813_v26 }
 0xc99   :  { %4995 = vmatpush3.bf16.msra.mxu0 %v4992_v14 }
 0xc9a   :  { %4997 = vmatprep.subr.bf16.mxu0 %v4996_v17 }
 0xc9d   :  { %4999 = vmatpush3.bf16.msra.mxu0 %v4996_v17 }
 0xc9e   :  { %5001 = vmatprep.subr.bf16.mxu0 %v5000_v20 }
 0xca1   :  { %5003 = vmatpush3.bf16.msra.mxu0 %v5000_v20 }
 0xca2   :  { %5005 = vmatprep.subr.bf16.mxu0 %v5004_v22 }
 0xca5   :  { %5007 = vmatpush3.bf16.msra.mxu0 %v5004_v22  ;;  %v4483_v22 = vld [vmem:[%s5962_s13] ss:$0 sm:$0xff] }
 0xca6   :  { %4856 = vmatprep.subr.mxu0 %v5224_v36 }
 0xd6b   :  { %v4804_v30 = vpop.f32.mrb[6].mxu0 }
 0xd6c   :  { %v1908_v31 = vadd.f32 %v4804_v30, %v4477_v29  ;;  %v1889_v32 = vpop.f32.mrb[7].mxu0 }
 0xd6d   :  { %v1907_v34 = vadd.f32 %v4477_v29, %v1889_v32 }
 0xd6e   :  { %v1910_v37 = vadd.f32 %v1908_v31, %v5365_v35 }
 0xd6f   :  { %v1909_v40 = vadd.f32 %v1907_v34, %v5361_v33  ;;  %v1955_v33 = vld [vmem:[%s5959_s10] sm:$0xff] }
 0xd70   :  { %v1916_v42 = vsel %vm61_vm0, %v1910_v37, 0.0  ;;  %v4984_v53 = vpack.c.bf16 %v1956_v52, %v1955_v33 }
 0xd71   :  { %1917 = vadd.xlane.f32.xlu0 %v1916_v42  ;;  %v1913_v43 = vsel %vm61_vm0, %v1909_v40, 0.0 }
 0xd72   :  { %1914 = vadd.xlane.f32.xlu1 %v1913_v43  ;;  %4985 = vmatprep.subr.bf16.mxu1 %v4984_v53 }
 0xd73   :  { %4987 = vmatpush3.bf16.msra.mxu1 %v4984_v53 }
 0xd74   :  { %4989 = vmatprep.subr.bf16.mxu1 %v4988_v56 }
 0xd77   :  { %4991 = vmatpush3.bf16.msra.mxu1 %v4988_v56 }
 0xdfe   :  { %v1918_v44 = vpop.xlane.xlu0 %1917 }
 0xdff   :  { %v1920_v45 = vmul.f32 0.03125, %v1918_v44  ;;  %v1915_v46 = vpop.xlane.xlu1 %1914 }
 0xe00   :  { %v1919_v47 = vmul.f32 0.03125, %v1915_v46 }
 0xe01   :  { %v1922_v38 = vsub.f32 %v1910_v37, %v1920_v45 }
 0xe02   :  { %v1921_v48 = vsub.f32 %v1909_v40, %v1919_v47 }
 0xe03   :  { %v1924_v28 = vmul.f32 %v1922_v38, %v1922_v38 }
 0xe04   :  { %v1923_v49 = vmul.f32 %v1921_v48, %v1921_v48 }
 0xe05   :  { %v1928_v51 = vsel %vm61_vm0, %v1924_v28, 0.0 }
 0xe06   :  { %1929 = vadd.xlane.f32.xlu1 %v1928_v51  ;;  %v1925_v35 = vsel %vm61_vm0, %v1923_v49, 0.0 }
 0xe07   :  { %1926 = vadd.xlane.f32.xlu0 %v1925_v35 }
 0xe93   :  { %v1930_v57 = vpop.xlane.xlu1 %1929 }
 0xe94   :  { %v1932_v60 = vmul.f32 0.03125, %v1930_v57  ;;  %v1927_v61 = vpop.xlane.xlu0 %1926 }
 0xe95   :  { %v1931_v62 = vmul.f32 0.03125, %v1927_v61 }
 0xe96   :  { %v1934_v63 = vadd.f32 1e-12, %v1932_v60 }
 0xe97   :  { %v1933_v0 = vadd.f32 1e-12, %v1931_v62 }
 0xe98   :  { %5107 = vrsqrt.f32 %v1934_v63 }
 0xe99   :  { %5109 = vrsqrt.f32 %v1933_v0 }
 0xea2   :  { %v5108_v1 = vpop.eup %5107 }
 0xea3   :  { %v5110_v4 = vpop.eup %5109  ;;  %v1938_v5 = vmul.f32 %v5108_v1, %v1922_v38 }
 0xea4   :  { %v1937_v6 = vmul.f32 %v5110_v4, %v1921_v48 }
 0xea5   :  { %v1946_v8 = vmul.f32 %v4478_v2, %v1938_v5 }
 0xea6   :  { %v1945_v9 = vmul.f32 %v4478_v2, %v1937_v6 }
 0xea7   :  { %v5588_v11 = vadd.f32 %v4479_v7, %v1946_v8 }
 0xea8   :  { %v5586_v10 = vadd.f32 %v4479_v7, %v1945_v9  ;;  %v5238_v9 = vmov -1.0  }
 0xeaa   :  { %4813 = vmatprep.mubr.msk.f32.mxu1 %vm61_vm0, %v5586_v10 }
 0xeab   :  { %4814 = vmatmul.mubr.msk.f32.vlgmr.msra.gmra.mrb[22].mxu1 %vm61_vm0, %v5588_v11 }
 0xf7e   :  { %v4815_v24 = vpop.f32.mrb[22].mxu1 }
 0xf7f   :  { %v2044_v41 = vadd.f32 %v4815_v24, %v4480_v23  ;;  %v2038_v25 = vpop.f32.mrb[23].mxu1 }
 0xf80   :  { %v2039_v26 = vadd.f32 %v4480_v23, %v2038_v25 }
 0xf81   :  { %v2050_v27 = vmul.f32 0.70710677, %v2044_v41  ;;  %v2048_v20 = vmul.f32 0.5, %v2044_v41 }
 0xf82   :  { %v2049_v29 = vmul.f32 0.70710677, %v2039_v26  ;;  %v2047_v18 = vmul.f32 0.5, %v2039_v26 }
 0xf83   :  { %v2056_v30 = vand.u32 2147483647, %v2050_v27  ;;  %vm2052_vm3 = vcmp.ge.f32.partialorder %v2050_v27, 0.0 }
 0xf84   :  { %v2055_v31 = vand.u32 2147483647, %v2049_v29  ;;  %vm2051_vm4 = vcmp.ge.f32.partialorder %v2049_v29, 0.0  ;;  %v2054_v12 = vsel %vm2052_vm3, 1.0, %v5238_v9 }
 0xf85   :  { %v2058_v32 = vmul.f32 0.3275911, %v2056_v30  ;;  %v2084_v42 = vsub.f32 0.0, %v2056_v30  ;;  %v2053_v15 = vsel %vm2051_vm4, 1.0, %v5238_v9 }
 0xf86   :  { %v2057_v34 = vmul.f32 0.3275911, %v2055_v31  ;;  %v2083_v43 = vsub.f32 0.0, %v2055_v31 }
 0xf87   :  { %v2060_v37 = vadd.f32 1.0, %v2058_v32  ;;  %v2086_v45 = vmul.f32 %v2084_v42, %v2056_v30 }
 0xf88   :  { %v2059_v40 = vadd.f32 1.0, %v2057_v34  ;;  %v2085_v38 = vmul.f32 %v2083_v43, %v2055_v31 }
 0xf89   :  { %5111 = vrcp.f32 %v2060_v37  ;;  %v2089_v49 = vmul.f32 1.442695, %v2086_v45 }
 0xf8a   :  { %5113 = vrcp.f32 %v2059_v40  ;;  %v2087_v33 = vmul.f32 1.442695, %v2085_v38  ;;  %v4490_v38 = vld [vmem:[%s5953_s4 + $0x30] sm:$0xff] }
 0xf8b   :  { %5115 = vpow2.f32 %v2089_v49 }
 0xf8c   :  { %5117 = vpow2.f32 %v2087_v33 }
 0xf93   :  { %v5112_v44 = vpop.eup %5111 }
 0xf94   :  { %v5114_v46 = vpop.eup %5113  ;;  %v2066_v47 = vmul.f32 1.0614054, %v5112_v44 }
 0xf95   :  { %v2065_v48 = vmul.f32 1.0614054, %v5114_v46  ;;  %v5116_v2 = vpop.eup %5115 }
 0xf96   :  { %v2068_v28 = vadd.f32 -1.4531521, %v2066_v47  ;;  %v5118_v5 = vpop.eup %5117 }
 0xf97   :  { %v2067_v51 = vadd.f32 -1.4531521, %v2065_v48  ;;  %v4491_v48 = vld [vmem:[%s5953_s4 + $0x38] sm:$0xff] }
 0xf98   :  { %v2070_v35 = vmul.f32 %v5112_v44, %v2068_v28  ;;  %v5012_v28 = vpack.c.bf16 %v4491_v48, %v4490_v38 }
 0xf99   :  { %v2069_v52 = vmul.f32 %v5114_v46, %v2067_v51 }
 0xf9a   :  { %v2072_v53 = vadd.f32 1.4214138, %v2070_v35 }
 0xf9b   :  { %v2071_v54 = vadd.f32 1.4214138, %v2069_v52 }
 0xf9c   :  { %v2074_v55 = vmul.f32 %v5112_v44, %v2072_v53 }
 0xf9d   :  { %v2073_v56 = vmul.f32 %v5114_v46, %v2071_v54 }
 0xf9e   :  { %v2076_v57 = vadd.f32 -0.28449672, %v2074_v55  ;;  %v4486_v55 = vld [vmem:[%s5963_s14] ss:$0 sm:$0xff] }
 0xf9f   :  { %v2075_v60 = vadd.f32 -0.28449672, %v2073_v56 }
 0xfa0   :  { %v2078_v61 = vmul.f32 %v5112_v44, %v2076_v57 }
 0xfa1   :  { %v2077_v62 = vmul.f32 %v5114_v46, %v2075_v60 }
 0xfa2   :  { %v2080_v63 = vadd.f32 0.2548296, %v2078_v61  ;;  %v4487_v61 = vld [vmem:[%s5964_s15] ss:$0 sm:$0xff] }
 0xfa3   :  { %v2079_v0 = vadd.f32 0.2548296, %v2077_v62 }
 0xfa4   :  { %v2082_v1 = vmul.f32 %v5112_v44, %v2080_v63 }
 0xfa5   :  { %v2081_v4 = vmul.f32 %v5114_v46, %v2079_v0  ;;  %v4489_v46 = vld [vmem:[%s5953_s4 + $0x28] sm:$0xff] }
 0xfa6   :  { %v2092_v6 = vmul.f32 %v5116_v2, %v2082_v1  ;;  %v4493_v2 = vld [vmem:[%s5954_s5 + $0x1] ss:$0 sm:$0xff]  ;;  %s5979_s5 = smov 72  }
 0xfa7   :  { %v2091_v7 = vmul.f32 %v5118_v5, %v2081_v4 }
 0xfa8   :  { %v2094_v8 = vsub.f32 1.0, %v2092_v6 }
 0xfa9   :  { %v2093_v13 = vsub.f32 1.0, %v2091_v7 }
 0xfaa   :  { %v2096_v14 = vmul.f32 %v2094_v8, %v2054_v12 }
 0xfab   :  { %v2095_v16 = vmul.f32 %v2093_v13, %v2053_v15 }
 0xfac   :  { %v2098_v17 = vadd.f32 1.0, %v2096_v14 }
 0xfad   :  { %v2097_v19 = vadd.f32 1.0, %v2095_v16 }
 0xfae   :  { %v2100_v39 = vmul.f32 %v2098_v17, %v2048_v20 }
 0xfaf   :  { %v2099_v21 = vmul.f32 %v2097_v19, %v2047_v18 }
 0xfb1   :  { %4832 = vmatprep.mubr.msk.f32.mxu0 %vm2116_vm5, %v2099_v21 }
 0xfb2   :  { %4833 = vmatmul.mubr.msk.f32.vlgmr.msra.gmra.mrb[14].mxu0 %vm2116_vm5, %v2100_v39 }
 0xfb3   :  { %4858 = vmatprep.mubr.msk.f32.mxu0 %vm5225_vm1, %v5224_v36 }
0x1085   :  { %v4834_v23 = vpop.f32.mrb[14].mxu0 }
0x1086   :  { %v2195_v24 = vadd.f32 %v4834_v23, %v4483_v22  ;;  %v2189_v25 = vpop.f32.mrb[15].mxu0 }
0x1087   :  { %v2190_v26 = vadd.f32 %v4483_v22, %v2189_v25 }
0x1088   :  { %v2199_v41 = vadd.f32 %v2195_v24, %v5588_v11 }
0x1089   :  { %v2198_v27 = vadd.f32 %v2190_v26, %v5586_v10  ;;  %v4488_v10 = vld [vmem:[%s5953_s4 + $0x20] sm:$0xff] }
0x108a   :  { %v2205_v29 = vsel %vm61_vm0, %v2199_v41, 0.0  ;;  %v5008_v47 = vpack.c.bf16 %v4489_v46, %v4488_v10 }
0x108b   :  { %2206 = vadd.xlane.f32.xlu1 %v2205_v29  ;;  %v2202_v30 = vsel %vm61_vm0, %v2198_v27, 0.0 }
0x108c   :  { %2203 = vadd.xlane.f32.xlu0 %v2202_v30  ;;  %5009 = vmatprep.subr.bf16.mxu1 %v5008_v47 }
0x108d   :  { %5011 = vmatpush3.bf16.msra.mxu1 %v5008_v47 }
0x108e   :  { %5013 = vmatprep.subr.bf16.mxu1 %v5012_v28 }
0x1091   :  { %5015 = vmatpush3.bf16.msra.mxu1 %v5012_v28 }
0x1092   :  { %4846 = vmatprep.subr.mxu1 %v5224_v36 }
0x1118   :  { %v2207_v31 = vpop.xlane.xlu1 %2206 }
0x1119   :  { %v2209_v32 = vmul.f32 0.03125, %v2207_v31  ;;  %v2204_v34 = vpop.xlane.xlu0 %2203 }
0x111a   :  { %v2208_v37 = vmul.f32 0.03125, %v2204_v34 }
0x111b   :  { %v2211_v40 = vsub.f32 %v2199_v41, %v2209_v32 }
0x111c   :  { %v2210_v42 = vsub.f32 %v2198_v27, %v2208_v37 }
0x111d   :  { %v2213_v43 = vmul.f32 %v2211_v40, %v2211_v40 }
0x111e   :  { %v2212_v44 = vmul.f32 %v2210_v42, %v2210_v42 }
0x111f   :  { %v2217_v45 = vsel %vm61_vm0, %v2213_v43, 0.0 }
0x1120   :  { %2218 = vadd.xlane.f32.xlu1 %v2217_v45  ;;  %v2214_v11 = vsel %vm61_vm0, %v2212_v44, 0.0 }
0x1121   :  { %2215 = vadd.xlane.f32.xlu0 %v2214_v11 }
0x11ad   :  { %v2219_v49 = vpop.xlane.xlu1 %2218 }
0x11ae   :  { %v2221_v51 = vmul.f32 0.03125, %v2219_v49  ;;  %v2216_v35 = vpop.xlane.xlu0 %2215 }
0x11af   :  { %v2220_v33 = vmul.f32 0.03125, %v2216_v35 }
0x11b0   :  { %v2223_v52 = vadd.f32 1e-12, %v2221_v51 }
0x11b1   :  { %v2222_v53 = vadd.f32 1e-12, %v2220_v33 }
0x11b2   :  { %5119 = vrsqrt.f32 %v2223_v52 }
0x11b3   :  { %5121 = vrsqrt.f32 %v2222_v53 }
0x11bc   :  { %v5120_v54 = vpop.eup %5119 }
0x11bd   :  { %v5122_v56 = vpop.eup %5121  ;;  %v2227_v57 = vmul.f32 %v5120_v54, %v2211_v40 }
0x11be   :  { %v2226_v60 = vmul.f32 %v5122_v56, %v2210_v42 }
0x11bf   :  { %v2235_v62 = vmul.f32 %v4486_v55, %v2227_v57 }
0x11c0   :  { %v2234_v63 = vmul.f32 %v4486_v55, %v2226_v60 }
0x11c1   :  { %v5658_v1 = vadd.f32 %v4487_v61, %v2235_v62 }
0x11c2   :  { %v5656_v0 = vadd.f32 %v4487_v61, %v2234_v63 }
0x11c4   :  { %4843 = vmatprep.mubr.msk.f32.mxu1 %vm61_vm0, %v5656_v0 }
0x11c5   :  { %4844 = vmatmul.mubr.msk.f32.vlgmr.msra.gmra.mrb[24].mxu1 %vm61_vm0, %v5658_v1 }
0x11c6   :  { %4848 = vmatprep.mubr.msk.f32.mxu1 %vm5225_vm1, %v5224_v36 }
0x1298   :  { %v4845_v4 = vpop.f32.mrb[24].mxu1 }
0x1299   :  { %v5669_v5 = vadd.f32 %v4845_v4, %v4493_v2  ;;  %v2329_v6 = vpop.f32.mrb[25].mxu1 }
0x129a   :  { %v5671_v7 = vadd.f32 %v4493_v2, %v2329_v6 }
0x129b   :  { %2421 = vrot.lane.b32.xlu1 %v5669_v5, %s5226_s26 }
0x129c   :  { %2344 = vrot.lane.b32.xlu0 %v5671_v7, %s5226_s26  ;;  %s5980_s26 = smov 104  }
0x130d   :  { %v2422_v12 = vpop.permute.xlu1 %2421 }
0x130e   :  { %v2345_v8 = vpop.permute.xlu0 %2344 }
0x130f   :  { %4847 = vmatpush3.xpose.msk.msra.mxu1 %vm230_vm2, %v2345_v8 }
0x1310   :  { %4851 = vmatprep.subr.mxu1 %v5224_v36 }
0x1312   :  { %4849 = vmatmul.mubr.msk.f32.vlgmr.msra.gmra.mrb[26].mxu1 %vm230_vm2, %v5671_v7 }
0x1313   :  { %4852 = vmatpush3.xpose.msk.msra.mxu1 %vm230_vm2, %v2422_v12  ;;  %4853 = vmatprep.mubr.msk.f32.mxu1 %vm5225_vm1, %v5224_v36 }
0x1314   :  { %4861 = vmatprep.subr.mxu1 %v5224_v36 }
0x1316   :  { %4854 = vmatmul.mubr.msk.f32.vlgmr.msra.gmra.mrb[28].mxu1 %vm230_vm2, %v5669_v5 }
0x1317   :  { %4863 = vmatprep.mubr.msk.f32.mxu1 %vm5225_vm1, %v5224_v36 }
0x13e5   :  { %v2416_v13 = vpop.f32.mrb[26].mxu1 }
0x13e6   :  { %v4850_v14 = vpop.f32.mrb[27].mxu1  ;;  %v2497_v20 = vmul.f32 0.35355338, %v2416_v13 }
0x13e8   :  { %v2499_v21 = vadd.f32 %v2497_v20, %v5417_v3 }
0x13e9   :  { %v2493_v15 = vpop.f32.mrb[28].mxu1 }
0x13ea   :  { %v2498_v16 = vmul.f32 0.35355338, %v2493_v15  ;;  %v4855_v17 = vpop.f32.mrb[29].mxu1  ;;  %v2501_v39 = vsel %vm230_vm2, %v2499_v21, -inf }
0x13ec   :  { %v2500_v18 = vadd.f32 %v2498_v16, %v5408_v59 }
0x13ee   :  { %v2504_v19 = vsel %vm230_vm2, %v2500_v18, -inf }
0x13ef   :  { %2505 = vmax.xlane.f32.xlu1 %v2504_v19 }
0x1400   :  { %2755 = vrot.lane.b32.xlu1 %v5669_v5, %s5228_s0 }
0x1404   :  { %2753 = vrot.lane.b32.xlu1 %v5669_v5, %s5229_s30 }
0x1428   :  { %2502 = vmax.xlane.f32.xlu1 %v2501_v39 }
0x1439   :  { %2677 = vrot.lane.b32.xlu1 %v5671_v7, %s5228_s0 }
0x143d   :  { %2675 = vrot.lane.b32.xlu1 %v5671_v7, %s5229_s30  ;;  %s5239_s30 = smov [#allocation2]  }
0x1441   :  { %3173 = vrot.lane.b32.xlu1 %v5671_v7, %s5230_s18 }
0x147c   :  { %v2506_v22 = vpop.xlane.xlu1 %2505 }
0x147d   :  { %v2508_v23 = vsub.f32 %v2500_v18, %v2506_v22 }
0x147f   :  { %v2511_v24 = vmul.f32 1.442695, %v2508_v23 }
0x1480   :  { %v2756_v41 = vpop.permute.xlu1 %2755 }
0x1481   :  { %5123 = vpow2.f32 %v2511_v24 }
0x1484   :  { %v2754_v27 = vpop.permute.xlu1 %2753 }
0x148b   :  { %v5124_v25 = vpop.eup %5123 }
0x148c   :  { %v2516_v26 = vsel %vm230_vm2, %v5124_v25, 0.0 }
0x148d   :  { %2517 = vadd.xlane.f32.xlu0 %v2516_v26 }
0x14a3   :  { %2599 = vrot.lane.b32.xlu0 %v5669_v5, %s5231_s19 }
0x14b5   :  { %v2503_v29 = vpop.xlane.xlu1 %2502 }
0x14b6   :  { %v2507_v30 = vsub.f32 %v2499_v21, %v2503_v29 }
0x14b8   :  { %v2509_v31 = vmul.f32 1.442695, %v2507_v30 }
0x14b9   :  { %v2678_v10 = vpop.permute.xlu1 %2677 }
0x14ba   :  { %5125 = vpow2.f32 %v2509_v31 }
0x14bd   :  { %v2676_v47 = vpop.permute.xlu1 %2675 }
0x14c1   :  { %v3174_v8 = vpop.permute.xlu1 %3173 }
0x14c4   :  { %v5126_v32 = vpop.eup %5125 }
0x14c5   :  { %v2513_v34 = vsel %vm230_vm2, %v5126_v32, 0.0 }
0x14c6   :  { %2514 = vadd.xlane.f32.xlu0 %v2513_v34 }
0x14dc   :  { %2523 = vrot.lane.b32.xlu0 %v5671_v7, %s5231_s19 }
0x151a   :  { %v2518_v37 = vpop.xlane.xlu0 %2517 }
0x151b   :  { %5127 = vrcp.f32 %v2518_v37 }
0x151e   :  { %v2600_v40 = vpop.permute.xlu0 %2599 }
0x151f   :  { %4862 = vmatpush3.msra.mxu1 %v2600_v40 }
0x1520   :  { %4871 = vmatprep.subr.mxu1 %v5224_v36 }
0x1525   :  { %v5128_v42 = vpop.eup %5127 }
0x1526   :  { %v2522_v43 = vmul.f32 %v5128_v42, %v5124_v25 }
0x1528   :  { %4864 = vmatmul.mubr.msk.f32.vlgmr.msra.gmra.mrb[30].mxu1 %vm230_vm2, %v2522_v43 }
0x1529   :  { %4872 = vmatpush3.xpose.msk.msra.mxu1 %vm230_vm2, %v2756_v41  ;;  %4873 = vmatprep.mubr.msk.f32.mxu1 %vm5225_vm1, %v5224_v36 }
0x152a   :  { %4881 = vmatprep.subr.mxu1 %v5224_v36 }
0x152c   :  { %4874 = vmatmul.mubr.msk.f32.vlgmr.msra.gmra.mrb[32].mxu1 %vm230_vm2, %v2754_v27 }
0x152d   :  { %4883 = vmatprep.mubr.msk.f32.mxu1 %vm5225_vm1, %v5224_v36 }
0x1553   :  { %v2515_v44 = vpop.xlane.xlu0 %2514 }
0x1554   :  { %5129 = vrcp.f32 %v2515_v44 }
0x1557   :  { %v2524_v45 = vpop.permute.xlu0 %2523 }
0x1558   :  { %4857 = vmatpush3.msra.mxu0 %v2524_v45  ;;  %v4497_v45 = vld [vmem:[%s5955_s6 + $0x28] sm:$0xff] }
0x1559   :  { %4866 = vmatprep.subr.mxu0 %v5224_v36 }
0x155e   :  { %v5130_v11 = vpop.eup %5129 }
0x155f   :  { %v2520_v46 = vmul.f32 %v5130_v11, %v5126_v32  ;;  %v4496_v11 = vld [vmem:[%s5955_s6 + $0x20] sm:$0xff] }
0x1561   :  { %4859 = vmatmul.mubr.msk.f32.vlgmr.msra.gmra.mrb[16].mxu0 %vm230_vm2, %v2520_v46 }
0x1562   :  { %4867 = vmatpush3.xpose.msk.msra.mxu0 %vm230_vm2, %v2678_v10  ;;  %4868 = vmatprep.mubr.msk.f32.mxu0 %vm5225_vm1, %v5224_v36 }
0x1563   :  { %4876 = vmatprep.subr.mxu0 %v5224_v36 }
0x1565   :  { %4869 = vmatmul.mubr.msk.f32.vlgmr.msra.gmra.mrb[18].mxu0 %vm230_vm2, %v2676_v47 }
0x1566   :  { %4878 = vmatprep.mubr.msk.f32.mxu0 %vm5225_vm1, %v5224_v36 }
0x15fb   :  { %v5727_v38 = vpop.f32.mrb[30].mxu1 }
0x15fc   :  { %v4865_v48 = vpop.f32.mrb[31].mxu1 }
0x15ff   :  { %v2827_v28 = vpop.f32.mrb[32].mxu1 }
0x1600   :  { %v2832_v49 = vmul.f32 0.35355338, %v2827_v28  ;;  %v4875_v51 = vpop.f32.mrb[33].mxu1 }
0x1602   :  { %v2834_v35 = vadd.f32 %v2832_v49, %v5408_v59 }
0x1604   :  { %v2838_v33 = vsel %vm230_vm2, %v2834_v35, -inf }
0x1605   :  { %2839 = vmax.xlane.f32.xlu0 %v2838_v33 }
0x161b   :  { %2933 = vrot.lane.b32.xlu0 %v5669_v5, %s5232_s1 }
0x161f   :  { %3171 = vrot.lane.b32.xlu0 %v5671_v7, %s5233_s20 }
0x1623   :  { %3249 = vrot.lane.b32.xlu0 %v5669_v5, %s5233_s20 }
0x1634   :  { %v5737_v52 = vpop.f32.mrb[16].mxu0 }
0x1635   :  { %v4860_v53 = vpop.f32.mrb[17].mxu0 }
0x1638   :  { %v2749_v54 = vpop.f32.mrb[18].mxu0 }
0x1639   :  { %v4870_v55 = vpop.f32.mrb[19].mxu0  ;;  %v2831_v2 = vmul.f32 0.35355338, %v2749_v54 }
0x163b   :  { %v2833_v4 = vadd.f32 %v2831_v2, %v5417_v3 }
0x163d   :  { %v2835_v6 = vsel %vm230_vm2, %v2833_v4, -inf }
0x1692   :  { %v2840_v56 = vpop.xlane.xlu0 %2839 }
0x1693   :  { %v2842_v57 = vsub.f32 %v2834_v35, %v2840_v56 }
0x1695   :  { %v2845_v60 = vmul.f32 1.442695, %v2842_v57 }
0x1696   :  { %v2934_v61 = vpop.permute.xlu0 %2933 }
0x1697   :  { %5131 = vpow2.f32 %v2845_v60  ;;  %4882 = vmatpush3.msra.mxu1 %v2934_v61  ;;  %v4498_v60 = vld [vmem:[%s5955_s6 + $0x30] sm:$0xff] }
0x1698   :  { %4896 = vmatprep.subr.mxu1 %v5224_v36 }
0x169a   :  { %v3172_v15 = vpop.permute.xlu0 %3171 }
0x169e   :  { %v3250_v17 = vpop.permute.xlu0 %3249 }
0x16a1   :  { %v5132_v62 = vpop.eup %5131 }
0x16a2   :  { %v2850_v63 = vsel %vm230_vm2, %v5132_v62, 0.0 }
0x16a3   :  { %2851 = vadd.xlane.f32.xlu1 %v2850_v63 }
0x16b4   :  { %3251 = vrot.lane.b32.xlu1 %v5669_v5, %s5230_s18 }
0x16d8   :  { %2836 = vmax.xlane.f32.xlu1 %v2835_v6 }
0x1730   :  { %v2852_v12 = vpop.xlane.xlu1 %2851 }
0x1731   :  { %5133 = vrcp.f32 %v2852_v12 }
0x1734   :  { %v3252_v16 = vpop.permute.xlu1 %3251 }
0x173b   :  { %v5134_v13 = vpop.eup %5133 }
0x173c   :  { %v2856_v14 = vmul.f32 %v5134_v13, %v5132_v62 }
0x173e   :  { %4884 = vmatmul.mubr.msk.f32.vlgmr.msra.gmra.mrb[34].mxu1 %vm230_vm2, %v2856_v14 }
0x173f   :  { %4897 = vmatpush3.xpose.msk.msra.mxu1 %vm230_vm2, %v3174_v8  ;;  %4898 = vmatprep.mubr.msk.f32.mxu1 %vm5225_vm1, %v5224_v36 }
0x1740   :  { %4901 = vmatprep.subr.mxu1 %v5224_v36 }
0x1742   :  { %4899 = vmatmul.mubr.msk.f32.vlgmr.msra.gmra.mrb[36].mxu1 %vm230_vm2, %v3172_v15 }
0x1743   :  { %4902 = vmatpush3.xpose.msk.msra.mxu1 %vm230_vm2, %v3252_v16  ;;  %4903 = vmatprep.mubr.msk.f32.mxu1 %vm5225_vm1, %v5224_v36 }
0x1744   :  { %4911 = vmatprep.subr.mxu1 %v5224_v36 }
0x1746   :  { %4904 = vmatmul.mubr.msk.f32.vlgmr.msra.gmra.mrb[38].mxu1 %vm230_vm2, %v3250_v17 }
0x1747   :  { %4913 = vmatprep.mubr.msk.f32.mxu1 %vm5225_vm1, %v5224_v36 }
0x1765   :  { %v2837_v18 = vpop.xlane.xlu1 %2836 }
0x1766   :  { %v2841_v19 = vsub.f32 %v2833_v4, %v2837_v18 }
0x1768   :  { %v2843_v20 = vmul.f32 1.442695, %v2841_v19 }
0x176a   :  { %5135 = vpow2.f32 %v2843_v20 }
0x1774   :  { %v5136_v21 = vpop.eup %5135 }
0x1775   :  { %v2847_v39 = vsel %vm230_vm2, %v5136_v21, 0.0 }
0x1776   :  { %2848 = vadd.xlane.f32.xlu0 %v2847_v39 }
0x178c   :  { %2857 = vrot.lane.b32.xlu0 %v5671_v7, %s5232_s1 }
0x1790   :  { %3429 = vrot.lane.b32.xlu0 %v5669_v5, %s5234_s21 }
0x1794   :  { %3590 = vrot.lane.b32.xlu0 %v5671_v7, %s5979_s5 }
0x1798   :  { %3668 = vrot.lane.b32.xlu0 %v5669_v5, %s5979_s5 }
0x179c   :  { %3588 = vrot.lane.b32.xlu0 %v5671_v7, %s5980_s26 }
0x1803   :  { %v2849_v22 = vpop.xlane.xlu0 %2848 }
0x1804   :  { %5137 = vrcp.f32 %v2849_v22 }
0x1807   :  { %v2858_v23 = vpop.permute.xlu0 %2857 }
0x1808   :  { %4877 = vmatpush3.msra.mxu0 %v2858_v23 }
0x1809   :  { %4886 = vmatprep.subr.mxu0 %v4497_v45 }
0x180b   :  { %v3430_v24 = vpop.permute.xlu0 %3429 }
0x180c   :  { %4912 = vmatpush3.msra.mxu1 %v3430_v24 }
0x180d   :  { %4921 = vmatprep.subr.mxu1 %v5224_v36 }
0x180e   :  { %v5138_v25 = vpop.eup %5137 }
0x180f   :  { %v2854_v26 = vmul.f32 %v5138_v25, %v5136_v21  ;;  %v3591_v62 = vpop.permute.xlu0 %3590 }
0x1811   :  { %4879 = vmatmul.mubr.msk.f32.vlgmr.msra.gmra.mrb[20].mxu0 %vm230_vm2, %v2854_v26  ;;  %v3005_v41 = vpop.f32.mrb[34].mxu1 }
0x1812   :  { %v4885_v27 = vpop.f32.mrb[35].mxu1  ;;  %4887 = vmatpush3.msra.mxu0 %v4497_v45  ;;  %v4499_v45 = vld [vmem:[%s5955_s6 + $0x38] sm:$0xff] }
0x1813   :  { %4891 = vmatprep.subr.mxu0 %v4496_v11  ;;  %v3669_v2 = vpop.permute.xlu0 %3668 }
0x1815   :  { %v3245_v29 = vpop.f32.mrb[36].mxu1 }
0x1816   :  { %v3327_v30 = vmul.f32 0.35355338, %v3245_v29  ;;  %v4900_v31 = vpop.f32.mrb[37].mxu1 }
0x1817   :  { %v3589_v6 = vpop.permute.xlu0 %3588 }
0x1818   :  { %v3329_v32 = vadd.f32 %v3327_v30, %v5417_v3 }
0x1819   :  { %v3323_v34 = vpop.f32.mrb[38].mxu1 }
0x181a   :  { %v3328_v37 = vmul.f32 0.35355338, %v3323_v34  ;;  %v4905_v40 = vpop.f32.mrb[39].mxu1  ;;  %v3331_v42 = vsel %vm230_vm2, %v3329_v32, -inf }
0x181b   :  { %3332 = vmax.xlane.f32.xlu1 %v3331_v42 }
0x181c   :  { %v3330_v43 = vadd.f32 %v3328_v37, %v5408_v59 }
0x181e   :  { %v3334_v44 = vsel %vm230_vm2, %v3330_v43, -inf }
0x181f   :  { %3335 = vmax.xlane.f32.xlu1 %v3334_v44 }
0x18a8   :  { %v3333_v10 = vpop.xlane.xlu1 %3332 }
0x18a9   :  { %v3337_v46 = vsub.f32 %v3329_v32, %v3333_v10 }
0x18ab   :  { %v3339_v47 = vmul.f32 1.442695, %v3337_v46 }
0x18ac   :  { %v3336_v48 = vpop.xlane.xlu1 %3335 }
0x18ad   :  { %5139 = vpow2.f32 %v3339_v47  ;;  %v3338_v28 = vsub.f32 %v3330_v43, %v3336_v48  ;;  %v4533_v47 = vld [vmem:[%s5956_s7 + $0x1] ss:$0 sm:$0xff] }
0x18af   :  { %v3341_v49 = vmul.f32 1.442695, %v3338_v28 }
0x18b1   :  { %5141 = vpow2.f32 %v3341_v49 }
0x18b7   :  { %v5140_v51 = vpop.eup %5139 }
0x18b8   :  { %v3343_v35 = vsel %vm230_vm2, %v5140_v51, 0.0 }
0x18b9   :  { %3344 = vadd.xlane.f32.xlu1 %v3343_v35 }
0x18bb   :  { %v5142_v33 = vpop.eup %5141 }
0x18bc   :  { %v3346_v53 = vsel %vm230_vm2, %v5142_v33, 0.0 }
0x18bd   :  { %3347 = vadd.xlane.f32.xlu1 %v3346_v53 }
0x18ce   :  { %3353 = vrot.lane.b32.xlu1 %v5671_v7, %s5234_s21  ;;  %s5981_s21 = smov 40  }
0x18d2   :  { %3666 = vrot.lane.b32.xlu1 %v5669_v5, %s5980_s26 }
0x18e4   :  { %v2929_v54 = vpop.f32.mrb[20].mxu0 }
0x18e5   :  { %v4880_v55 = vpop.f32.mrb[21].mxu0  ;;  %4888 = vmatprep.mubr.msk.f32.mxu0 %vm230_vm2, %v2929_v54 }
0x18e6   :  { %4889 = vmatmul.mubr.msk.f32.vlgmr.msra.gmra.mrb[22].mxu0 %vm230_vm2, %v3005_v41 }
0x18e7   :  { %4893 = vmatprep.mubr.msk.f32.mxu0 %vm230_vm2, %v5737_v52  ;;  %4892 = vmatpush3.msra.mxu0 %v4496_v11 }
0x18e8   :  { %4906 = vmatprep.subr.mxu0 %v5224_v36 }
0x18ee   :  { %4894 = vmatmul.mubr.msk.f32.vlgmr.msra.gmra.mrb[22].mxu0 %vm230_vm2, %v5727_v38 }
0x18ef   :  { %4908 = vmatprep.mubr.msk.f32.mxu0 %vm5225_vm1, %v5224_v36 }
0x1946   :  { %v3345_v56 = vpop.xlane.xlu1 %3344 }
0x1947   :  { %5143 = vrcp.f32 %v3345_v56 }
0x194a   :  { %v3348_v57 = vpop.xlane.xlu1 %3347 }
0x194b   :  { %5145 = vrcp.f32 %v3348_v57 }
0x194e   :  { %v3354_v61 = vpop.permute.xlu1 %3353 }
0x194f   :  { %4907 = vmatpush3.msra.mxu0 %v3354_v61 }
0x1950   :  { %4916 = vmatprep.subr.mxu0 %v4498_v60 }
0x1951   :  { %v5144_v52 = vpop.eup %5143 }
0x1952   :  { %v3350_v63 = vmul.f32 %v5144_v52, %v5140_v51  ;;  %v3667_v15 = vpop.permute.xlu1 %3666 }
0x1954   :  { %4909 = vmatmul.mubr.msk.f32.vlgmr.msra.gmra.mrb[24].mxu0 %vm230_vm2, %v3350_v63 }
0x1955   :  { %v5146_v38 = vpop.eup %5145  ;;  %4917 = vmatpush3.msra.mxu0 %v4498_v60 }
0x1956   :  { %v3352_v4 = vmul.f32 %v5146_v38, %v5142_v33  ;;  %4926 = vmatprep.subr.mxu0 %v5224_v36 }
0x1958   :  { %4914 = vmatmul.mubr.msk.f32.vlgmr.msra.gmra.mrb[40].mxu1 %vm230_vm2, %v3352_v4 }
0x1959   :  { %4922 = vmatpush3.xpose.msk.msra.mxu1 %vm230_vm2, %v3591_v62  ;;  %4923 = vmatprep.mubr.msk.f32.mxu1 %vm5225_vm1, %v5224_v36 }
0x195a   :  { %4931 = vmatprep.subr.mxu1 %v5224_v36 }
0x195c   :  { %4924 = vmatmul.mubr.msk.f32.vlgmr.msra.gmra.mrb[42].mxu1 %vm230_vm2, %v3589_v6  ;;  %v4540_v6 = vld [vmem:[%s5959_s10 + $0x30] sm:$0xff] }
0x195d   :  { %4933 = vmatprep.mubr.msk.f32.mxu1 %vm5225_vm1, %v5224_v36 }
0x1a27   :  { %v3425_v8 = vpop.f32.mrb[24].mxu0 }
0x1a28   :  { %v4910_v12 = vpop.f32.mrb[25].mxu0  ;;  %4918 = vmatprep.mubr.msk.f32.mxu0 %vm230_vm2, %v3425_v8  ;;  %v4541_v8 = vld [vmem:[%s5959_s10 + $0x38] sm:$0xff] }
0x1a29   :  { %v5020_v12 = vpack.c.bf16 %v4541_v8, %v4540_v6 }
0x1a2b   :  { %v3501_v13 = vpop.f32.mrb[40].mxu1 }
0x1a2c   :  { %v4915_v14 = vpop.f32.mrb[41].mxu1  ;;  %4919 = vmatmul.mubr.msk.f32.vlgmr.msra.gmra.mrb[22].mxu0 %vm230_vm2, %v3501_v13 }
0x1a2d   :  { %4927 = vmatpush3.xpose.msk.msra.mxu0 %vm230_vm2, %v3669_v2  ;;  %4928 = vmatprep.mubr.msk.f32.mxu0 %vm5225_vm1, %v5224_v36  ;;  %v4539_v2 = vld [vmem:[%s5959_s10 + $0x28] sm:$0xff] }
0x1a2e   :  { %4936 = vmatprep.subr.mxu0 %v5224_v36 }
0x1a2f   :  { %v3662_v16 = vpop.f32.mrb[42].mxu1 }
0x1a30   :  { %v3744_v17 = vmul.f32 0.35355338, %v3662_v16  ;;  %v4925_v18 = vpop.f32.mrb[43].mxu1  ;;  %4929 = vmatmul.mubr.msk.f32.vlgmr.msra.gmra.mrb[26].mxu0 %vm230_vm2, %v3667_v15 }
0x1a31   :  { %4938 = vmatprep.mubr.msk.f32.mxu0 %vm5225_vm1, %v5224_v36 }
0x1a32   :  { %v3746_v19 = vadd.f32 %v3744_v17, %v5417_v3 }
0x1a34   :  { %v3748_v20 = vsel %vm230_vm2, %v3746_v19, -inf }
0x1a35   :  { %3749 = vmax.xlane.f32.xlu0 %v3748_v20  ;;  %v4536_v20 = vld [vmem:[%s5957_s8 + $0x1] ss:$0 sm:$0xff]  ;;  %s4415_s8 = sshll.u32 %s5239_s30, 4  ;;  %s4416_s8 = int_to_ptr.vmem [resolvable:$true] %s4415_s8 }
0x1a36   :  { %p5181_p1 = scmp.lt.s32.totalorder %s4416_s8, %s4416_s8 }
0x1ac2   :  { %v3750_v21 = vpop.xlane.xlu0 %3749 }
0x1ac3   :  { %v3754_v39 = vsub.f32 %v3746_v19, %v3750_v21 }
0x1ac5   :  { %v3756_v22 = vmul.f32 1.442695, %v3754_v39 }
0x1ac7   :  { %5147 = vpow2.f32 %v3756_v22 }
0x1ad1   :  { %v5148_v23 = vpop.eup %5147 }
0x1ad2   :  { %v3760_v24 = vsel %vm230_vm2, %v5148_v23, 0.0 }
0x1ad3   :  { %3761 = vadd.xlane.f32.xlu0 %v3760_v24 }
0x1b03   :  { %v3740_v25 = vpop.f32.mrb[26].mxu0 }
0x1b04   :  { %v3745_v26 = vmul.f32 0.35355338, %v3740_v25  ;;  %v4930_v41 = vpop.f32.mrb[27].mxu0 }
0x1b06   :  { %v3747_v27 = vadd.f32 %v3745_v26, %v5408_v59 }
0x1b08   :  { %v3751_v36 = vsel %vm230_vm2, %v3747_v27, -inf }
0x1b09   :  { %3752 = vmax.xlane.f32.xlu1 %v3751_v36  ;;  %v4547_v36 = vld [vmem:[%s5961_s12 + $0x48] sm:$0xff] }
0x1b1a   :  { %3846 = vrot.lane.b32.xlu1 %v5669_v5, %s5981_s21 }
0x1b60   :  { %v3762_v59 = vpop.xlane.xlu0 %3761 }
0x1b96   :  { %v3753_v3 = vpop.xlane.xlu1 %3752 }
0x1b97   :  { %v3755_v29 = vsub.f32 %v3747_v27, %v3753_v3  ;;  %v4546_v27 = vld [vmem:[%s5961_s12 + $0x40] sm:$0xff] }
0x1b98   :  { %v5024_v3 = vpack.c.bf16 %v4547_v36, %v4546_v27 }
0x1b99   :  { %v3758_v30 = vmul.f32 1.442695, %v3755_v29  ;;  %v4548_v29 = vld [vmem:[%s5961_s12 + $0x50] sm:$0xff] }
0x1b9a   :  { %v3847_v31 = vpop.permute.xlu1 %3846 }
0x1b9b   :  { %5149 = vpow2.f32 %v3758_v30  ;;  %4937 = vmatpush3.msra.mxu0 %v3847_v31  ;;  %v4549_v30 = vld [vmem:[%s5961_s12 + $0x58] sm:$0xff] }
0x1b9c   :  { %5151 = vrcp.f32 %v3762_v59  ;;  %4941 = vmatprep.subr.mxu0 %v4499_v45  ;;  %v5028_v31 = vpack.c.bf16 %v4549_v30, %v4548_v29 }
0x1ba5   :  { %v5150_v32 = vpop.eup %5149 }
0x1ba6   :  { %v3763_v34 = vsel %vm230_vm2, %v5150_v32, 0.0  ;;  %v5152_v40 = vpop.eup %5151 }
0x1ba7   :  { %3764 = vadd.xlane.f32.xlu0 %v3763_v34  ;;  %v3767_v42 = vmul.f32 %v5152_v40, %v5148_v23  ;;  %v4537_v23 = vld [vmem:[%s5958_s9 + $0x1] ss:$0 sm:$0xff]  ;;  %v4551_v34 = vld [vmem:[%s5961_s12 + $0x68] sm:$0xff]  ;;  %v4553_v40 = vld [vmem:[%s5961_s12 + $0x78] sm:$0xff] }
0x1bbd   :  { %3770 = vrot.lane.b32.xlu0 %v5671_v7, %s5981_s21 }
0x1c34   :  { %v3765_v37 = vpop.xlane.xlu0 %3764 }
0x1c35   :  { %5153 = vrcp.f32 %v3765_v37  ;;  %v4552_v37 = vld [vmem:[%s5961_s12 + $0x70] sm:$0xff] }
0x1c38   :  { %v3771_v5 = vpop.permute.xlu0 %3770 }
0x1c39   :  { %4932 = vmatpush3.msra.mxu1 %v3771_v5  ;;  %v4543_v5 = vld [vmem:[%s5960_s11 + $0x1] ss:$0 sm:$0xff] }
0x1c3a   :  { %4934 = vmatmul.mubr.msk.f32.vlgmr.msra.gmra.mrb[44].mxu1 %vm230_vm2, %v3767_v42  ;;  %v5036_v42 = vpack.c.bf16 %v4553_v40, %v4552_v37 }
0x1c3f   :  { %v5154_v43 = vpop.eup %5153 }
0x1c40   :  { %v3769_v44 = vmul.f32 %v5154_v43, %v5150_v32  ;;  %v4550_v32 = vld [vmem:[%s5961_s12 + $0x60] sm:$0xff] }
0x1c41   :  { %v5032_v59 = vpack.c.bf16 %v4551_v34, %v4550_v32 }
0x1c42   :  { %4939 = vmatmul.mubr.msk.f32.vlgmr.msra.gmra.mrb[28].mxu0 %vm230_vm2, %v3769_v44 }
0x1c43   :  { %4942 = vmatpush3.msra.mxu0 %v4499_v45 }
0x1c44   :  { %5025 = vmatprep.subr.bf16.mxu0 %v5024_v3 }
0x1d0d   :  { %v3842_v7 = vpop.f32.mrb[44].mxu1 }
0x1d0e   :  { %v4935_v11 = vpop.f32.mrb[45].mxu1  ;;  %4943 = vmatprep.mubr.msk.f32.mxu0 %vm230_vm2, %v3842_v7 }
0x1d15   :  { %v3918_v10 = vpop.f32.mrb[28].mxu0 }
0x1d16   :  { %v4940_v46 = vpop.f32.mrb[29].mxu0  ;;  %4944 = vmatmul.mubr.msk.f32.vlgmr.msra.gmra.mrb[22].mxu0 %vm230_vm2, %v3918_v10 }
0x1d17   :  { %5027 = vmatpush3.bf16.msra.mxu0 %v5024_v3 }
0x1d18   :  { %5029 = vmatprep.subr.bf16.mxu0 %v5028_v31 }
0x1d1b   :  { %5031 = vmatpush3.bf16.msra.mxu0 %v5028_v31 }
0x1d1c   :  { %5033 = vmatprep.subr.bf16.mxu0 %v5032_v59 }
0x1d1f   :  { %5035 = vmatpush3.bf16.msra.mxu0 %v5032_v59  ;;  %v4555_v59 = vld [vmem:[%s5962_s13 + $0x1] ss:$0 sm:$0xff] }
0x1d20   :  { %5037 = vmatprep.subr.bf16.mxu0 %v5036_v42 }
0x1d23   :  { %5039 = vmatpush3.bf16.msra.mxu0 %v5036_v42 }
0x1de9   :  { %v4945_v48 = vpop.f32.mrb[22].mxu0 }
0x1dea   :  { %v4014_v28 = vadd.f32 %v4945_v48, %v4533_v47  ;;  %v3994_v49 = vpop.f32.mrb[23].mxu0 }
0x1deb   :  { %v4013_v51 = vadd.f32 %v4533_v47, %v3994_v49 }
0x1dec   :  { %v4016_v35 = vadd.f32 %v4014_v28, %v5658_v1 }
0x1ded   :  { %v4015_v33 = vadd.f32 %v4013_v51, %v5656_v0  ;;  %v4538_v0 = vld [vmem:[%s5959_s10 + $0x20] sm:$0xff] }
0x1dee   :  { %v4024_v53 = vsel %vm61_vm0, %v4016_v35, 0.0  ;;  %v5016_v4 = vpack.c.bf16 %v4539_v2, %v4538_v0 }
0x1def   :  { %4025 = vadd.xlane.f32.xlu0 %v4024_v53  ;;  %v4021_v54 = vsel %vm61_vm0, %v4015_v33, 0.0 }
0x1df0   :  { %4022 = vadd.xlane.f32.xlu1 %v4021_v54  ;;  %5017 = vmatprep.subr.bf16.mxu1 %v5016_v4 }
0x1df1   :  { %5019 = vmatpush3.bf16.msra.mxu1 %v5016_v4 }
0x1df2   :  { %5021 = vmatprep.subr.bf16.mxu1 %v5020_v12 }
0x1df5   :  { %5023 = vmatpush3.bf16.msra.mxu1 %v5020_v12 }
0x1e7c   :  { %v4026_v55 = vpop.xlane.xlu0 %4025 }
0x1e7d   :  { %v4028_v56 = vmul.f32 0.03125, %v4026_v55  ;;  %v4023_v57 = vpop.xlane.xlu1 %4022 }
0x1e7e   :  { %v4027_v60 = vmul.f32 0.03125, %v4023_v57 }
0x1e7f   :  { %v4030_v61 = vsub.f32 %v4016_v35, %v4028_v56 }
0x1e80   :  { %v4029_v62 = vsub.f32 %v4015_v33, %v4027_v60 }
0x1e81   :  { %v4032_v52 = vmul.f32 %v4030_v61, %v4030_v61 }
0x1e82   :  { %v4031_v63 = vmul.f32 %v4029_v62, %v4029_v62 }
0x1e83   :  { %v4036_v38 = vsel %vm61_vm0, %v4032_v52, 0.0 }
0x1e84   :  { %4037 = vadd.xlane.f32.xlu1 %v4036_v38  ;;  %v4033_v1 = vsel %vm61_vm0, %v4031_v63, 0.0 }
0x1e85   :  { %4034 = vadd.xlane.f32.xlu0 %v4033_v1 }
0x1f11   :  { %v4038_v13 = vpop.xlane.xlu1 %4037 }
0x1f12   :  { %v4040_v14 = vmul.f32 0.03125, %v4038_v13  ;;  %v4035_v15 = vpop.xlane.xlu0 %4034 }
0x1f13   :  { %v4039_v16 = vmul.f32 0.03125, %v4035_v15 }
0x1f14   :  { %v4042_v17 = vadd.f32 1e-12, %v4040_v14 }
0x1f15   :  { %v4041_v18 = vadd.f32 1e-12, %v4039_v16 }
0x1f16   :  { %5155 = vrsqrt.f32 %v4042_v17 }
0x1f17   :  { %5157 = vrsqrt.f32 %v4041_v18 }
0x1f20   :  { %v5156_v19 = vpop.eup %5155 }
0x1f21   :  { %v5158_v21 = vpop.eup %5157  ;;  %v4046_v39 = vmul.f32 %v5156_v19, %v4030_v61 }
0x1f22   :  { %v4045_v22 = vmul.f32 %v5158_v21, %v4029_v62 }
0x1f23   :  { %v4054_v24 = vmul.f32 %v4536_v20, %v4046_v39 }
0x1f24   :  { %v4053_v25 = vmul.f32 %v4536_v20, %v4045_v22 }
0x1f25   :  { %v5864_v41 = vadd.f32 %v4537_v23, %v4054_v24 }
0x1f26   :  { %v5862_v26 = vadd.f32 %v4537_v23, %v4053_v25 }
0x1f28   :  { %4954 = vmatprep.mubr.msk.f32.mxu1 %vm61_vm0, %v5862_v26 }
0x1f29   :  { %4955 = vmatmul.mubr.msk.f32.vlgmr.msra.gmra.mrb[46].mxu1 %vm61_vm0, %v5864_v41 }
0x1ffc   :  { %v4956_v43 = vpop.f32.mrb[46].mxu1 }
0x1ffd   :  { %v4154_v44 = vadd.f32 %v4956_v43, %v4543_v5  ;;  %v4148_v45 = vpop.f32.mrb[47].mxu1 }
0x1ffe   :  { %v4149_v7 = vadd.f32 %v4543_v5, %v4148_v45 }
0x1fff   :  { %v4160_v11 = vmul.f32 0.70710677, %v4154_v44  ;;  %v4158_v31 = vmul.f32 0.5, %v4154_v44 }
0x2000   :  { %v4159_v10 = vmul.f32 0.70710677, %v4149_v7  ;;  %v4157_v29 = vmul.f32 0.5, %v4149_v7 }
0x2001   :  { %v4166_v46 = vand.u32 2147483647, %v4160_v11  ;;  %vm4162_vm6 = vcmp.ge.f32.partialorder %v4160_v11, 0.0 }
0x2002   :  { %v4165_v47 = vand.u32 2147483647, %v4159_v10  ;;  %vm4161_vm7 = vcmp.ge.f32.partialorder %v4159_v10, 0.0  ;;  %v4164_v23 = vsel %vm4162_vm6, 1.0, %v5238_v9 }
0x2003   :  { %v4168_v48 = vmul.f32 0.3275911, %v4166_v46  ;;  %v4194_v35 = vsub.f32 0.0, %v4166_v46  ;;  %v4163_v27 = vsel %vm4161_vm7, 1.0, %v5238_v9 }
0x2004   :  { %v4167_v28 = vmul.f32 0.3275911, %v4165_v47  ;;  %v4193_v33 = vsub.f32 0.0, %v4165_v47 }
0x2005   :  { %v4170_v49 = vadd.f32 1.0, %v4168_v48  ;;  %v4196_v54 = vmul.f32 %v4194_v35, %v4166_v46 }
0x2006   :  { %v4169_v51 = vadd.f32 1.0, %v4167_v28  ;;  %v4195_v57 = vmul.f32 %v4193_v33, %v4165_v47  ;;  %v4368_v33 = vsub.s32 1, %v5401_v50 }
0x2007   :  { %5159 = vrcp.f32 %v4170_v49  ;;  %v4199_v62 = vmul.f32 1.442695, %v4196_v54 }
0x2008   :  { %5161 = vrcp.f32 %v4169_v51  ;;  %v4197_v38 = vmul.f32 1.442695, %v4195_v57 }
0x2009   :  { %5163 = vpow2.f32 %v4199_v62 }
0x200a   :  { %5165 = vpow2.f32 %v4197_v38  ;;  %v4560_v38 = vld [vmem:[%s5963_s14 + $0x1] ss:$0 sm:$0xff]  ;;  %s5176_s14 = scalar_lea.vmem %s4416_s8, 256 }
0x200b   :  { %p5177_p0 = scmp.ne.s32.totalorder %s4416_s8, %s5176_s14  ;;  %p5182_p2 = scmp.lt.s32.totalorder %s5176_s14, %s5176_s14 }
0x200d   :  { %p5183_p3 = por %p5182_p2, %p5181_p1 }
0x200f   :  { %p5184_p4 = pnand %p5183_p3, %p5177_p0 }
0x2011   :  { %v5160_v53 = vpop.eup %5159 }
0x2012   :  { %v5162_v55 = vpop.eup %5161  ;;  %v4176_v56 = vmul.f32 1.0614054, %v5160_v53 }
0x2013   :  { %v4175_v60 = vmul.f32 1.0614054, %v5162_v55  ;;  %v5164_v18 = vpop.eup %5163 }
0x2014   :  { %v4178_v61 = vadd.f32 -1.4531521, %v4176_v56  ;;  %v5166_v20 = vpop.eup %5165 }
0x2015   :  { %v4177_v52 = vadd.f32 -1.4531521, %v4175_v60 }
0x2016   :  { %v4180_v63 = vmul.f32 %v5160_v53, %v4178_v61 }
0x2017   :  { %v4179_v1 = vmul.f32 %v5162_v55, %v4177_v52 }
0x2018   :  { %v4182_v0 = vadd.f32 1.4214138, %v4180_v63 }
0x2019   :  { %v4181_v2 = vadd.f32 1.4214138, %v4179_v1 }
0x201a   :  { %v4184_v4 = vmul.f32 %v5160_v53, %v4182_v0 }
0x201b   :  { %v4183_v6 = vmul.f32 %v5162_v55, %v4181_v2 }
0x201c   :  { %v4186_v8 = vadd.f32 -0.28449672, %v4184_v4 }
0x201d   :  { %v4185_v12 = vadd.f32 -0.28449672, %v4183_v6 }
0x201e   :  { %v4188_v13 = vmul.f32 %v5160_v53, %v4186_v8 }
0x201f   :  { %v4187_v14 = vmul.f32 %v5162_v55, %v4185_v12 }
0x2020   :  { %v4190_v15 = vadd.f32 0.2548296, %v4188_v13 }
0x2021   :  { %v4189_v16 = vadd.f32 0.2548296, %v4187_v14 }
0x2022   :  { %v4192_v17 = vmul.f32 %v5160_v53, %v4190_v15 }
0x2023   :  { %v4191_v19 = vmul.f32 %v5162_v55, %v4189_v16 }
0x2024   :  { %v4202_v21 = vmul.f32 %v5164_v18, %v4192_v17 }
0x2025   :  { %v4201_v39 = vmul.f32 %v5166_v20, %v4191_v19 }
0x2026   :  { %v4204_v22 = vsub.f32 1.0, %v4202_v21 }
0x2027   :  { %v4203_v24 = vsub.f32 1.0, %v4201_v39 }
0x2028   :  { %v4206_v25 = vmul.f32 %v4204_v22, %v4164_v23 }
0x2029   :  { %v4205_v36 = vmul.f32 %v4203_v24, %v4163_v27 }
0x202a   :  { %v4208_v3 = vadd.f32 1.0, %v4206_v25 }
0x202b   :  { %v4207_v30 = vadd.f32 1.0, %v4205_v36 }
0x202c   :  { %v4210_v34 = vmul.f32 %v4208_v3, %v4158_v31 }
0x202d   :  { %v4209_v32 = vmul.f32 %v4207_v30, %v4157_v29 }
0x202f   :  { %4973 = vmatprep.mubr.msk.f32.mxu0 %vm2116_vm5, %v4209_v32 }
0x2030   :  { %4974 = vmatmul.mubr.msk.f32.vlgmr.msra.gmra.mrb[30].mxu0 %vm2116_vm5, %v4210_v34 }
0x2103   :  { %v4975_v37 = vpop.f32.mrb[30].mxu0 }
0x2104   :  { %v4306_v40 = vadd.f32 %v4975_v37, %v4555_v59  ;;  %v4300_v42 = vpop.f32.mrb[31].mxu0 }
0x2105   :  { %v4301_v5 = vadd.f32 %v4555_v59, %v4300_v42 }
0x2106   :  { %v4310_v9 = vadd.f32 %v4306_v40, %v5864_v41  ;;  %v5175_v41 = vld [vmem:[%s5978_s29] sm:$0x3] }
0x2107   :  { %v4309_v43 = vadd.f32 %v4301_v5, %v5862_v26  ;;  %v4390_v35 = vsel %vm4389_vm8, %v5175_v41, 0.0  ;;  %v4369_v53 = vrot.slane %v5175_v41, %v4368_v33  ;;  %v4362_v54 = vrot.slane %v5175_v41, %v5405_v58  ;;  %v4561_v58 = vld [vmem:[%s5964_s15 + $0x1] ss:$0 sm:$0xff] }
0x2108   :  { %v4318_v44 = vsel %vm61_vm0, %v4310_v9, 0.0 }
0x2109   :  { %4319 = vadd.xlane.f32.xlu0 %v4318_v44  ;;  %v4315_v45 = vsel %vm61_vm0, %v4309_v43, 0.0 }
0x210a   :  { %4316 = vadd.xlane.f32.xlu1 %v4315_v45 }
0x2196   :  { %v4320_v7 = vpop.xlane.xlu0 %4319 }
0x2197   :  { %v4322_v11 = vmul.f32 0.03125, %v4320_v7  ;;  %v4317_v10 = vpop.xlane.xlu1 %4316 }
0x2198   :  { %v4321_v46 = vmul.f32 0.03125, %v4317_v10 }
0x2199   :  { %v4324_v47 = vsub.f32 %v4310_v9, %v4322_v11 }
0x219a   :  { %v4323_v48 = vsub.f32 %v4309_v43, %v4321_v46 }
0x219b   :  { %v4326_v28 = vmul.f32 %v4324_v47, %v4324_v47 }
0x219c   :  { %v4325_v49 = vmul.f32 %v4323_v48, %v4323_v48 }
0x219d   :  { %v4330_v51 = vsel %vm61_vm0, %v4326_v28, 0.0 }
0x219e   :  { %4331 = vadd.xlane.f32.xlu0 %v4330_v51  ;;  %v4327_v26 = vsel %vm61_vm0, %v4325_v49, 0.0 }
0x219f   :  { %4328 = vadd.xlane.f32.xlu1 %v4327_v26 }
0x21a2   :  { %4391 = vadd.xlane.f32.xlu0 %v4390_v35 }
0x21b0   :  { %4371 = vbcast.lane.b32.xlu1 %v4369_v53, 256 }
0x21b8   :  { %4364 = vbcast.lane.b32.xlu0 %v4362_v54, 256 }
0x222b   :  { %v4332_v55 = vpop.xlane.xlu0 %4331 }
0x222c   :  { %v4334_v56 = vmul.f32 0.03125, %v4332_v55  ;;  %v4329_v57 = vpop.xlane.xlu1 %4328 }
0x222d   :  { %v4333_v60 = vmul.f32 0.03125, %v4329_v57 }
0x222e   :  { %v4336_v61 = vadd.f32 1e-12, %v4334_v56 }
0x222f   :  { %v4335_v62 = vadd.f32 1e-12, %v4333_v60  ;;  %v4392_v52 = vpop.xlane.xlu0 %4391 }
0x2230   :  { %5167 = vrsqrt.f32 %v4336_v61  ;;  %v4393_v2 = vmax.f32 %v4392_v52, 1e-09  ;;  %v4372_v6 = vpop.permute.xlu1 %4371 }
0x2231   :  { %5169 = vrsqrt.f32 %v4335_v62 }
0x2232   :  { %v4395_v15 = vrot.slane %v4393_v2, 1 }
0x2233   :  { %v4365_v13 = vpop.permute.xlu0 %4364 }
0x223a   :  { %v5168_v63 = vpop.eup %5167 }
0x223b   :  { %v5170_v50 = vpop.eup %5169  ;;  %v4340_v1 = vmul.f32 %v5168_v63, %v4324_v47 }
0x223c   :  { %v4339_v0 = vmul.f32 %v5170_v50, %v4323_v48 }
0x223d   :  { %v4348_v4 = vmul.f32 %v4560_v38, %v4340_v1 }
0x223e   :  { %v4347_v8 = vmul.f32 %v4560_v38, %v4339_v0 }
0x223f   :  { %v4356_v12 = vadd.f32 %v4561_v58, %v4348_v4 }
0x2240   :  { %v4355_v14 = vadd.f32 %v4561_v58, %v4347_v8 }
0x2241   :  { %4358 = vst.msk [vmem:[#allocation2 + $0x8] sm:$0xff] %vm61_vm0, %v4356_v12  ;;  %v4374_v16 = vmul.f32 %v4372_v6, %v4356_v12 }
0x2242   :  { %4357 = vst.msk [vmem:[#allocation2] sm:$0xff] %vm61_vm0, %v4355_v14  ;;  %v4373_v17 = vmul.f32 %v4365_v13, %v4355_v14 }
0x2243   :  { %v4382_v18 = vsel %vm61_vm0, %v4374_v16, 0.0 }
0x2244   :  { %5187 = shalt.err (!%p5184_p4)
}
0x2245   :  { %s5188_s19 = scalar_lea.hbm %s5965_s16, 256 }
0x2246   :  { %p5189_p5 = scmp.ne.s32.totalorder %s5965_s16, %s5188_s19  ;;  %p5192_p6 = scmp.lt.u32.totalorder %s5188_s19, %s5965_s16 }
0x2248   :  { %p5194_p7 = pnand %p5192_p6, %p5189_p5 }
0x224a   :  { %5197 = shalt.err (!%p5194_p7)
}
0x224b   :  { %s5240_s2 = smov 128   ;;  %s5241_s3 = smov 8   ;;  %v4383_v19 = vrot.slane %v4382_v18, 4  ;;  %v4375_v20 = vsel %vm61_vm0, %v4373_v17, 0.0  ;;  %5171 = vrcp.f32 %v4395_v15  ;;  %vm4405_vm9 = vcmask 1041409  }
0x224c   :  { %4421 = dma.vmem_to_hbm [thread:$0]  %s4416_s8, 256, %s5965_s16, [#allocation3], %s5240_s2, %s5240_s2, %s5241_s3   ;;  %v4376_v21 = vrot.slane %v4375_v20, 4  ;;  %5173 = vrcp.f32 %v4393_v2  ;;  %vm4408_vm10 = vcmask 254976  }
0x224d   :  { %v4384_v39 = vadd.f32 %v4383_v19, %v4382_v18  ;;  %s5242_s16 = smov [#allocation4]  }
0x224e   :  { %v4377_v22 = vadd.f32 %v4376_v21, %v4375_v20  ;;  %s4428_s6 = sshll.u32 %s5242_s16, 4  ;;  %s4429_s6 = int_to_ptr.vmem [resolvable:$true] %s4428_s6 }
0x224f   :  { %v4385_v23 = vrot.slane %v4384_v39, 2  ;;  %s5198_s7 = scalar_lea.vmem %s4429_s6, 32  ;;  %p5203_p9 = scmp.lt.s32.totalorder %s4429_s6, %s4429_s6 }
0x2250   :  { %v4378_v24 = vrot.slane %v4377_v22, 2  ;;  %p5199_p8 = scmp.ne.s32.totalorder %s4429_s6, %s5198_s7  ;;  %p5204_p10 = scmp.lt.s32.totalorder %s5198_s7, %s5198_s7 }
0x2251   :  { %v4386_v25 = vadd.f32 %v4385_v23, %v4384_v39 }
0x2252   :  { %v4379_v27 = vadd.f32 %v4378_v24, %v4377_v22  ;;  %p5205_p11 = por %p5204_p10, %p5203_p9 }
0x2253   :  { %v4387_v36 = vrot.slane %v4386_v25, 1 }
0x2254   :  { %v4380_v3 = vrot.slane %v4379_v27, 1  ;;  %p5206_p12 = pnand %p5205_p11, %p5199_p8 }
0x2255   :  { %v4388_v29 = vadd.f32 %v4387_v36, %v4386_v25  ;;  %v5172_v30 = vpop.eup %5171 }
0x2256   :  { %v4381_v31 = vadd.f32 %v4380_v3, %v4379_v27  ;;  %v5174_v32 = vpop.eup %5173 }
0x2257   :  { %v4401_v34 = vmul.f32 %v5172_v30, %v4388_v29 }
0x2258   :  { %v4399_v59 = vmul.f32 %v5174_v32, %v4381_v31 }
0x2259   :  { %v4404_v37 = vrot.slane %v4401_v34, 7 }
0x225b   :  { %v4406_v40 = vsel %vm4405_vm9, %v4404_v37, %v4399_v59 }
0x225c   :  { %4409 = vst.msk [vmem:[#allocation4] sm:$0x3] %vm4408_vm10, %v4406_v40 }
0x225d   :  { %5209 = shalt.err (!%p5206_p12)
}
0x225e   :  { %s5210_s22 = scalar_lea.hbm %s5966_s17, 32 }
0x225f   :  { %p5211_p13 = scmp.ne.s32.totalorder %s5966_s17, %s5210_s22  ;;  %p5214_p0 = scmp.lt.u32.totalorder %s5210_s22, %s5966_s17 }
0x2261   :  { %p5216_p1 = pnand %p5214_p0, %p5211_p13 }
0x2263   :  { %5219 = shalt.err (!%p5216_p1)
}
0x2264   :  { %4431 = dma.vmem_to_hbm [thread:$0]  %s4429_s6, 32, %s5966_s17, [#allocation5]  }
0x2265   :  { %5220 = dma.done.wait [#allocation3], 256  }
0x2266   :  { %5221 = vsyncadd [#allocation3], 4294967040 }
0x2267   :  { %5222 = dma.done.wait [#allocation5], 32  }
0x2268   :  { %5223 = vsyncadd [#allocation5], 4294967264 }
0x2269   :  { %4438 = vsyncpa [#allocation3], 1 }
0x226a   :  { %4439 = vsyncpa [#allocation5], 1 }

</bundles_post_ra>
